<compile_context>
chip_gen: v6e
topology: v6e:2x2x1
jax: 0.10.0
libtpu: 0.0.40
codegen_flags: <defaults>
</compile_context>

<pallas_src>
import functools
import math

import jax
import jax.numpy as jnp
import numpy as np
from jax.experimental import pallas as pl
from jax.experimental.pallas import tpu as pltpu


def _make_blur_kernel_2d(blur_kernel):
    k = np.asarray(blur_kernel, dtype=np.float64)
    k2 = np.outer(k, k)
    return k2 / k2.sum()


def _precompute_phase_weights(base_w, blur_kernel, up, K, pad0):
    """Blur-fused, flipped, phase-decomposed conv weights + demod SSQ matrix."""
    _, C_out, C_in, _, _ = base_w.shape
    conv_scale = 1.0 / math.sqrt(C_in * K * K)
    KB = len(blur_kernel)
    Keff = K + KB - 1
    padL = (K - 1) + pad0

    A = conv_scale * base_w[0].astype(jnp.float32)            # (C_out, C_in, K, K)
    Aflip = A[:, :, ::-1, ::-1]                                # transposed-conv kernel
    bk2 = jnp.asarray(_make_blur_kernel_2d(blur_kernel) * (up ** 2), jnp.float32)

    # Effective kernel of (transposed conv ∘ blur) = full 2-D convolution of the
    # flipped conv kernel with the flipped blur taps (tiny XLA correlation,
    # pure parameter packing, O(C_out*C_in*Keff^2)).
    Weff = jax.lax.conv_general_dilated(
        Aflip.reshape(C_out * C_in, 1, K, K), bk2[None, None],
        window_strides=(1, 1), padding=[(KB - 1, KB - 1), (KB - 1, KB - 1)],
        dimension_numbers=("NCHW", "OIHW", "NCHW"),
    ).reshape(C_out, C_in, Keff, Keff)

    # Sub-pixel decomposition: output parity ph uses taps Weff[k0::up] applied
    # to x[yo + base + s].  Embed all phases in a common T-tap window.
    info = []
    for ph in range(up):
        k0 = (padL - ph) % up
        n_taps = -((Keff - k0) // -up)          # ceil
        base = (ph + k0 - padL) // up           # exact division
        info.append((k0, n_taps, base))
    base_min = min(b for _, _, b in info)
    T = max(b + n for _, n, b in info) - base_min

    Wph = jnp.zeros((up, up, T, T, C_in, C_out), jnp.float32)
    for py, (ky0, nty, by_) in enumerate(info):
        oy = by_ - base_min
        for px, (kx0, ntx, bx_) in enumerate(info):
            ox = bx_ - base_min
            taps = Weff[:, :, ky0::up, kx0::up]                # (C_out,C_in,nty,ntx)
            taps = jnp.transpose(taps, (2, 3, 1, 0))           # (nty,ntx,C_in,C_out)
            Wph = Wph.at[py, px, oy:oy + nty, ox:ox + ntx].set(taps)
    Wph = Wph.reshape(up * up, T * T * C_in, C_out)

    # Demod sum-of-squares of the PRE-blur scaled base weights: S[i, o].
    S = jnp.transpose(jnp.sum(A * A, axis=(2, 3)), (1, 0))     # (C_in, C_out)
    return Wph, S, T, base_min


def _fused_up_conv_kernel(x_ref, style_ref, w_ref, d_ref, noise_ref, bias_ref,
                          nw_ref, out_ref, *, H, W, T, off0, n_phase, NB,
                          TILE_CO):
    # x_ref:     (NB, Hp, Wp, C_in)       halo-padded input, NHWC
    # style_ref: (NB, 1, 1, C_in)         per-sample style (EqualLinear output)
    # w_ref:     (T*T*C_in, n_phase*TILE_CO)  blur-fused phase weights (bf16)
    # d_ref:     (NB, 1, TILE_CO)         demod * sqrt(2)
    # noise_ref: (NB, H*W, n_phase)       phase-split shared noise
    # bias_ref:  (1, TILE_CO)             FusedLeakyReLU bias * sqrt(2)
    # nw_ref:    SMEM (1,)                AddNoise scalar * sqrt(2)
    # out_ref:   (NB, n_phase, H*W, TILE_CO)

    # Style modulation applied once to the activations (commutes with the conv),
    # then cast to bf16 so im2col copies + MXU matmul run at half width.
    x_all = (x_ref[...] * style_ref[...]).astype(jnp.bfloat16)   # (NB,Hp,Wp,C_in)

    # im2col for all NB samples at once: rows ordered [sample, y, x].
    cols = [x_all[:, off0 + ty:off0 + ty + H, off0 + tx:off0 + tx + W, :]
            for ty in range(T) for tx in range(T)]
    patches = jnp.concatenate(cols, axis=3)                      # (NB,H,W,T*T*C_in)
    patches = patches.reshape(NB * H * W, patches.shape[-1])

    # Single wide MXU matmul covering all up*up output phases, f32 accumulation.
    acc = jnp.dot(patches, w_ref[...],
                  preferred_element_type=jnp.float32)            # (NB*H*W, n_phase*TILE_CO)

    nscale = nw_ref[0]
    bias = bias_ref[...]                                         # (1, TILE_CO)
    d_all = d_ref[...]                                           # (NB, 1, TILE_CO)
    nz_all = noise_ref[...]                                      # (NB, H*W, n_phase)
    for b in range(NB):
        d = d_all[b]                                             # (1, TILE_CO)
        nz = nz_all[b]                                           # (H*W, n_phase)
        rows = acc[b * H * W:(b + 1) * H * W]                    # (H*W, n_phase*TILE_CO)
        for ph in range(n_phase):
            # demod + AddNoise + FusedLeakyReLU epilogue (sqrt(2) pre-folded).
            t = (rows[:, ph * TILE_CO:(ph + 1) * TILE_CO] * d
                 + nscale * nz[:, ph:ph + 1] + bias)
            out_ref[b, ph] = jnp.where(t >= 0.0, t, 0.2 * t).astype(out_ref.dtype)


def up_mod_conv_block(x, w_lat, noise, params, *, up, kernel_size, blur_kernel):
    aff_w, aff_b, base_w, noise_w, lrelu_b = params
    x = x.astype(jnp.float32)
    N, C_in, H, W = x.shape
    _, C_out, _, K, _ = base_w.shape
    assert K == kernel_size
    L = w_lat.shape[-1]
    KB = len(blur_kernel)

    # upfirdn2d geometry (same as the PyTorch block).
    p = KB - up - (K - 1)
    pad0 = (p + 1) // 2 + up - 1
    pad1 = p // 2 + 1
    H2 = (H - 1) * up + K + pad0 + pad1 - KB + 1
    W2 = (W - 1) * up + K + pad0 + pad1 - KB + 1
    # Sub-pixel decomposition assumes the standard StyleGAN2 up-block geometry.
    assert H2 == up * H and W2 == up * W
    # TODO(synk): support geometries where the blur changes the output extent.

    Wph, S, T, shift = _precompute_phase_weights(base_w, blur_kernel, up, K, pad0)
    PL = max(0, -shift)
    PR = max(0, shift + T - 1)
    off0 = max(shift, 0)
    n_phase = up * up
    TTC = T * T * C_in
    sqrt2 = 2.0 ** 0.5

    # ---- tiling -------------------------------------------------------------
    if C_out <= 128:
        TILE_CO = C_out
    else:
        TILE_CO = 256 if C_out % 256 == 0 else 128
    # TODO(synk): prefer TILE_CO=128 on v5e (4x128x128 MXU, 16 MiB scoped VMEM).
    assert C_out % TILE_CO == 0
    nCt = C_out // TILE_CO

    # Batch a few samples per grid step when H*W underfills the MXU rows.
    NB = 1
    if H * W < 256:
        for cand in (4, 2):
            if N % cand == 0:
                NB = cand
                break

    # ---- host-side parameter packing (O(params), not O(activations)) --------
    style = (w_lat.astype(jnp.float32)
             @ (aff_w.astype(jnp.float32) * (1.0 / math.sqrt(L))).T
             + aff_b.astype(jnp.float32))                        # (N, C_in)
    # Demod from the PRE-blur modulated weights (matches reference); sqrt(2)
    # of the FusedLeakyReLU gain folded into demod / noise scale / bias.
    demod = (jax.lax.rsqrt((style * style) @ S + 1e-8) * sqrt2)  # (N, C_out)
    demod = demod.reshape(N, 1, C_out)
    style4 = style.reshape(N, 1, 1, C_in)
    bias = (lrelu_b.astype(jnp.float32) * sqrt2).reshape(1, C_out)
    nw = (noise_w.astype(jnp.float32) * sqrt2).reshape(1)

    # Blur-fused phase weights: columns ordered [C_out-tile, phase, co-in-tile],
    # stored bf16 (MXU-native; halves weight DMA + VMEM).
    Wf = jnp.transpose(Wph, (1, 0, 2)).reshape(TTC, n_phase, nCt, TILE_CO)
    Wf = jnp.transpose(Wf, (0, 2, 1, 3)).reshape(TTC, nCt * n_phase * TILE_CO)
    Wf = Wf.astype(jnp.bfloat16)

    # Layout plumbing only (no zero inflation): NCHW -> NHWC + halo pad; noise
    # split into the up*up phases with the small phase axis last.
    x_nhwc = jnp.transpose(x, (0, 2, 3, 1))
    x_pad = jnp.pad(x_nhwc, ((0, 0), (PL, PR), (PL, PR), (0, 0)))
    Hp, Wp = x_pad.shape[1], x_pad.shape[2]
    nz = noise.astype(jnp.float32)[:, 0].reshape(N, H, up, W, up)
    nz = jnp.transpose(nz, (0, 1, 3, 2, 4)).reshape(N, H * W, n_phase)

    # ---- VMEM budget (double-buffered blocks + in-kernel temporaries) -------
    blk_bytes = (NB * Hp * Wp * C_in * 4 + NB * C_in * 4
                 + TTC * n_phase * TILE_CO * 2 + NB * TILE_CO * 4
                 + NB * H * W * max(n_phase, 128) * 4 + TILE_CO * 4
                 + NB * n_phase * H * W * TILE_CO * 4)
    tmp_bytes = NB * H * W * TTC * 2 + NB * H * W * n_phase * TILE_CO * 4
    vmem_limit = int(min(max(2 * blk_bytes + tmp_bytes + (8 << 20), 32 << 20),
                         100 << 20))
    # TODO(synk): v7x (64 MiB VMEM) production sizes need a contraction-blocked
    #             (per-tap) path instead of one monolithic im2col buffer.

    kernel = functools.partial(_fused_up_conv_kernel, H=H, W=W, T=T, off0=off0,
                               n_phase=n_phase, NB=NB, TILE_CO=TILE_CO)

    out = pl.pallas_call(
        kernel,
        out_shape=jax.ShapeDtypeStruct((N, n_phase, H * W, C_out), jnp.float32),
        # C_out tile is the OUTER grid axis so the (large) weight block index is
        # unchanged across the inner batch axis -> weights stay VMEM-resident.
        grid=(nCt, N // NB),
        in_specs=[
            pl.BlockSpec((NB, Hp, Wp, C_in), lambda c, n: (n, 0, 0, 0)),
            pl.BlockSpec((NB, 1, 1, C_in), lambda c, n: (n, 0, 0, 0)),
            pl.BlockSpec((TTC, n_phase * TILE_CO), lambda c, n: (0, c)),
            pl.BlockSpec((NB, 1, TILE_CO), lambda c, n: (n, 0, c)),
            pl.BlockSpec((NB, H * W, n_phase), lambda c, n: (n, 0, 0)),
            pl.BlockSpec((1, TILE_CO), lambda c, n: (0, c)),
            pl.BlockSpec(memory_space=pltpu.MemorySpace.SMEM),   # noise scale (1,)
        ],
        out_specs=pl.BlockSpec((NB, n_phase, H * W, TILE_CO),
                               lambda c, n: (n, 0, 0, c)),
        compiler_params=pltpu.CompilerParams(
            dimension_semantics=("parallel", "parallel"),
            vmem_limit_bytes=vmem_limit),
    )(x_pad, style4, Wf, demod, nz, bias, nw)

    # Layout plumbing: interleave the up*up phases back into NCHW.
    out = out.reshape(N, up, up, H, W, C_out)
    out = jnp.transpose(out, (0, 5, 3, 1, 4, 2)).reshape(N, C_out, H2, W2)
    return out


def reference_forward(x, w_lat, noise, params, *, up, kernel_size, blur_kernel):
    """Pure-JAX (XLA conv) reference implementing the same PyTorch semantics."""
    aff_w, aff_b, base_w, noise_w, lrelu_b = params
    N, C_in, H, W = x.shape
    _, C_out, _, K, _ = base_w.shape
    L = w_lat.shape[-1]
    conv_scale = 1.0 / math.sqrt(C_in * K * K)

    style = w_lat @ (aff_w * (1.0 / math.sqrt(L))).T + aff_b            # (N, C_in)
    wmod = conv_scale * base_w * style[:, None, :, None, None]          # (N,C_out,C_in,K,K)
    d = jax.lax.rsqrt(jnp.sum(wmod ** 2, axis=(2, 3, 4)) + 1e-8)
    wmod = wmod * d[:, :, None, None, None]

    outs = []
    for n in range(N):
        rhs = jnp.flip(wmod[n], axis=(2, 3))                            # (C_out,C_in,K,K)
        outs.append(jax.lax.conv_general_dilated(
            x[n:n + 1], rhs, window_strides=(1, 1),
            padding=[(K - 1, K - 1), (K - 1, K - 1)],
            lhs_dilation=(up, up),
            dimension_numbers=('NCHW', 'OIHW', 'NCHW')))
    out = jnp.concatenate(outs, axis=0)

    KB = len(blur_kernel)
    p = KB - up - (K - 1)
    pad0 = (p + 1) // 2 + up - 1
    pad1 = p // 2 + 1
    bk = jnp.asarray(_make_blur_kernel_2d(blur_kernel) * (up ** 2), jnp.float32)
    blur_rhs = jnp.broadcast_to(jnp.flip(bk)[None, None], (C_out, 1, KB, KB))
    out = jax.lax.conv_general_dilated(
        out, blur_rhs, window_strides=(1, 1),
        padding=[(pad0, pad1), (pad0, pad1)],
        dimension_numbers=('NCHW', 'OIHW', 'NCHW'),
        feature_group_count=C_out)

    out = out + noise_w[0] * noise
    out = out + lrelu_b[None, :, None, None]
    return jnp.where(out >= 0.0, out, 0.2 * out) * (2.0 ** 0.5)


if __name__ == "__main__":
    N, C_in, C_out, K, L, H, W, UP = 2, 4, 8, 3, 16, 8, 8, 2
    blur_kernel = [1, 3, 3, 1]

    key = jax.random.PRNGKey(0)
    ks = jax.random.split(key, 6)
    x = jax.random.normal(ks[0], (N, C_in, H, W), jnp.float32)
    w_lat = jax.random.normal(ks[1], (N, L), jnp.float32)
    noise = jax.random.normal(ks[2], (N, 1, UP * H, UP * W), jnp.float32)

    # Parameters (shapes from UpModConvBlock.__init__):
    aff_w = jax.random.normal(ks[3], (C_in, L), jnp.float32)       # EqualLinear.weight
    aff_b = jnp.ones((C_in,), jnp.float32)                         # EqualLinear.bias (bias_init=1)
    base_w = jax.random.normal(ks[4], (1, C_out, C_in, K, K), jnp.float32)
    # AddNoise.weight / FusedLeakyReLU.bias are zero-initialized in __init__;
    # use small deterministic nonzero values so those code paths are exercised.
    noise_w = jnp.full((1,), 0.1, jnp.float32)
    lrelu_b = 0.05 * jax.random.normal(ks[5], (C_out,), jnp.float32)
    params = (aff_w, aff_b, base_w, noise_w, lrelu_b)

    out = up_mod_conv_block(x, w_lat, noise, params,
                            up=UP, kernel_size=K, blur_kernel=blur_kernel)
    out = jax.block_until_ready(out)

    ref = reference_forward(x, w_lat, noise, params,
                            up=UP, kernel_size=K, blur_kernel=blur_kernel)
    ref = jax.block_until_ready(ref)

    assert out.shape == (N, C_out, UP * H, UP * W), out.shape
    max_err = float(jnp.max(jnp.abs(out - ref)))
    scale = max(float(jnp.max(jnp.abs(ref))), 1.0)
    # bf16 MXU inputs with f32 accumulation: allow 2% of the output range.
    assert max_err < 2e-2 * scale, \
        f"mismatch vs reference: max abs err = {max_err} (scale {scale})"
    print("KERNEL_OK")
</pallas_src>

<mosaic_0001>
module attributes {stable_mosaic.version = 11 : i64} {
  func.func @_fused_up_conv_kernel(%arg0: i32, %arg1: i32, %arg2: memref<2x10x10x4xf32, #tpu.memory_space<vmem>>, %arg3: memref<2x1x1x4xf32, #tpu.memory_space<vmem>>, %arg4: memref<36x32xbf16, #tpu.memory_space<vmem>>, %arg5: memref<2x1x8xf32, #tpu.memory_space<vmem>>, %arg6: memref<2x64x4xf32, #tpu.memory_space<vmem>>, %arg7: memref<1x8xf32, #tpu.memory_space<vmem>>, %arg8: memref<1xf32, #tpu.memory_space<smem>>, %arg9: memref<2x4x64x8xf32, #tpu.memory_space<vmem>>) attributes {dimension_semantics = [#tpu.dimension_semantics<parallel>, #tpu.dimension_semantics<parallel>], iteration_bounds = array<i64: 1, 1>, scalar_prefetch = 0 : i64, scratch_operands = 0 : i64, tpu.core_type = #tpu.core_type<tc>, window_params = [{transform_indices = @transform_0, window_bounds = array<i64: 2, 10, 10, 4>}, {transform_indices = @transform_1, window_bounds = array<i64: 2, 1, 1, 4>}, {transform_indices = @transform_2, window_bounds = array<i64: 36, 32>}, {transform_indices = @transform_3, window_bounds = array<i64: 2, 1, 8>}, {transform_indices = @transform_4, window_bounds = array<i64: 2, 64, 4>}, {transform_indices = @transform_5, window_bounds = array<i64: 1, 8>}, {transform_indices = @transform_6, window_bounds = array<i64: 1>}, {transform_indices = @transform_7, window_bounds = array<i64: 2, 4, 64, 8>}]} {
    %c0 = arith.constant 0 : index
    %c0_0 = arith.constant 0 : index
    %c0_1 = arith.constant 0 : index
    %c0_2 = arith.constant 0 : index
    %0 = vector.load %arg2[%c0, %c0_0, %c0_1, %c0_2] : memref<2x10x10x4xf32, #tpu.memory_space<vmem>>, vector<2x10x10x4xf32>
    %c0_3 = arith.constant 0 : index
    %c0_4 = arith.constant 0 : index
    %c0_5 = arith.constant 0 : index
    %c0_6 = arith.constant 0 : index
    %1 = vector.load %arg3[%c0_3, %c0_4, %c0_5, %c0_6] : memref<2x1x1x4xf32, #tpu.memory_space<vmem>>, vector<2x1x1x4xf32>
    %2 = vector.broadcast %1 : vector<2x1x1x4xf32> to vector<2x10x10x4xf32>
    %3 = arith.mulf %0, %2 : vector<2x10x10x4xf32>
    %4 = arith.truncf %3 : vector<2x10x10x4xf32> to vector<2x10x10x4xbf16>
    %5 = vector.extract_strided_slice %4 {offsets = [0, 0, 0, 0], sizes = [2, 8, 8, 4], strides = [1, 1, 1, 1]} : vector<2x10x10x4xbf16> to vector<2x8x8x4xbf16>
    %6 = vector.extract_strided_slice %4 {offsets = [0, 0, 1, 0], sizes = [2, 8, 8, 4], strides = [1, 1, 1, 1]} : vector<2x10x10x4xbf16> to vector<2x8x8x4xbf16>
    %7 = vector.extract_strided_slice %4 {offsets = [0, 0, 2, 0], sizes = [2, 8, 8, 4], strides = [1, 1, 1, 1]} : vector<2x10x10x4xbf16> to vector<2x8x8x4xbf16>
    %8 = vector.extract_strided_slice %4 {offsets = [0, 1, 0, 0], sizes = [2, 8, 8, 4], strides = [1, 1, 1, 1]} : vector<2x10x10x4xbf16> to vector<2x8x8x4xbf16>
    %9 = vector.extract_strided_slice %4 {offsets = [0, 1, 1, 0], sizes = [2, 8, 8, 4], strides = [1, 1, 1, 1]} : vector<2x10x10x4xbf16> to vector<2x8x8x4xbf16>
    %10 = vector.extract_strided_slice %4 {offsets = [0, 1, 2, 0], sizes = [2, 8, 8, 4], strides = [1, 1, 1, 1]} : vector<2x10x10x4xbf16> to vector<2x8x8x4xbf16>
    %11 = vector.extract_strided_slice %4 {offsets = [0, 2, 0, 0], sizes = [2, 8, 8, 4], strides = [1, 1, 1, 1]} : vector<2x10x10x4xbf16> to vector<2x8x8x4xbf16>
    %12 = vector.extract_strided_slice %4 {offsets = [0, 2, 1, 0], sizes = [2, 8, 8, 4], strides = [1, 1, 1, 1]} : vector<2x10x10x4xbf16> to vector<2x8x8x4xbf16>
    %13 = vector.extract_strided_slice %4 {offsets = [0, 2, 2, 0], sizes = [2, 8, 8, 4], strides = [1, 1, 1, 1]} : vector<2x10x10x4xbf16> to vector<2x8x8x4xbf16>
    %14 = tpu.concatenate %5, %6, %7, %8, %9, %10, %11, %12, %13 in 3 : vector<2x8x8x4xbf16>, vector<2x8x8x4xbf16>, vector<2x8x8x4xbf16>, vector<2x8x8x4xbf16>, vector<2x8x8x4xbf16>, vector<2x8x8x4xbf16>, vector<2x8x8x4xbf16>, vector<2x8x8x4xbf16>, vector<2x8x8x4xbf16> -> vector<2x8x8x36xbf16>
    %15 = vector.shape_cast %14 : vector<2x8x8x36xbf16> to vector<128x36xbf16>
    %c0_7 = arith.constant 0 : index
    %c0_8 = arith.constant 0 : index
    %16 = vector.load %arg4[%c0_7, %c0_8] : memref<36x32xbf16, #tpu.memory_space<vmem>>, vector<36x32xbf16>
    %cst = arith.constant dense<0.000000e+00> : vector<128x32xf32>
    %17 = tpu.matmul %15, %16, %cst {dimension_numbers = #tpu.dot_dimension_numbers<[1], [0], [0], [1], [0, 0, 1, 1], [], []>} : vector<128x36xbf16>, vector<36x32xbf16>, vector<128x32xf32> -> vector<128x32xf32>
    %c0_9 = arith.constant 0 : index
    %18 = memref.load %arg8[%c0_9] : memref<1xf32, #tpu.memory_space<smem>>
    %c0_10 = arith.constant 0 : index
    %c0_11 = arith.constant 0 : index
    %19 = vector.load %arg7[%c0_10, %c0_11] : memref<1x8xf32, #tpu.memory_space<vmem>>, vector<1x8xf32>
    %c0_12 = arith.constant 0 : index
    %c0_13 = arith.constant 0 : index
    %c0_14 = arith.constant 0 : index
    %20 = vector.load %arg5[%c0_12, %c0_13, %c0_14] : memref<2x1x8xf32, #tpu.memory_space<vmem>>, vector<2x1x8xf32>
    %c0_15 = arith.constant 0 : index
    %c0_16 = arith.constant 0 : index
    %c0_17 = arith.constant 0 : index
    %21 = vector.load %arg6[%c0_15, %c0_16, %c0_17] : memref<2x64x4xf32, #tpu.memory_space<vmem>>, vector<2x64x4xf32>
    %22 = vector.extract_strided_slice %20 {offsets = [0, 0, 0], sizes = [1, 1, 8], strides = [1, 1, 1]} : vector<2x1x8xf32> to vector<1x1x8xf32>
    %23 = vector.shape_cast %22 : vector<1x1x8xf32> to vector<1x8xf32>
    %24 = vector.extract_strided_slice %21 {offsets = [0, 0, 0], sizes = [1, 64, 4], strides = [1, 1, 1]} : vector<2x64x4xf32> to vector<1x64x4xf32>
    %25 = vector.shape_cast %24 : vector<1x64x4xf32> to vector<64x4xf32>
    %26 = vector.extract_strided_slice %17 {offsets = [0, 0], sizes = [64, 32], strides = [1, 1]} : vector<128x32xf32> to vector<64x32xf32>
    %27 = vector.extract_strided_slice %26 {offsets = [0, 0], sizes = [64, 8], strides = [1, 1]} : vector<64x32xf32> to vector<64x8xf32>
    %28 = vector.broadcast %23 : vector<1x8xf32> to vector<64x8xf32>
    %29 = arith.mulf %27, %28 : vector<64x8xf32>
    %30 = vector.extract_strided_slice %25 {offsets = [0, 0], sizes = [64, 1], strides = [1, 1]} : vector<64x4xf32> to vector<64x1xf32>
    %31 = vector.broadcast %18 : f32 to vector<64x1xf32>
    %32 = arith.mulf %31, %30 : vector<64x1xf32>
    %33 = vector.broadcast %32 : vector<64x1xf32> to vector<64x8xf32>
    %34 = arith.addf %29, %33 : vector<64x8xf32>
    %35 = vector.broadcast %19 : vector<1x8xf32> to vector<64x8xf32>
    %36 = arith.addf %34, %35 : vector<64x8xf32>
    %cst_18 = arith.constant 0.000000e+00 : f32
    %37 = vector.broadcast %cst_18 : f32 to vector<64x8xf32>
    %38 = arith.cmpf oge, %36, %37 : vector<64x8xf32>
    %cst_19 = arith.constant 2.000000e-01 : f32
    %39 = vector.broadcast %cst_19 : f32 to vector<64x8xf32>
    %40 = arith.mulf %39, %36 : vector<64x8xf32>
    %41 = arith.select %38, %36, %40 : vector<64x8xi1>, vector<64x8xf32>
    %c0_20 = arith.constant 0 : index
    %c0_21 = arith.constant 0 : index
    %c0_22 = arith.constant 0 : index
    %c0_23 = arith.constant 0 : index
    %42 = vector.load %arg9[%c0_20, %c0_21, %c0_22, %c0_23] : memref<2x4x64x8xf32, #tpu.memory_space<vmem>>, vector<1x1x64x8xf32>
    %43 = vector.shape_cast %42 : vector<1x1x64x8xf32> to vector<64x8xf32>
    %44 = vector.shape_cast %41 : vector<64x8xf32> to vector<1x1x64x8xf32>
    tpu.vector_store %arg9[%c0_20, %c0_21, %c0_22, %c0_23], %44 {strides = array<i32>} : memref<2x4x64x8xf32, #tpu.memory_space<vmem>>, vector<1x1x64x8xf32>,
    %45 = vector.extract_strided_slice %26 {offsets = [0, 8], sizes = [64, 8], strides = [1, 1]} : vector<64x32xf32> to vector<64x8xf32>
    %46 = vector.broadcast %23 : vector<1x8xf32> to vector<64x8xf32>
    %47 = arith.mulf %45, %46 : vector<64x8xf32>
    %48 = vector.extract_strided_slice %25 {offsets = [0, 1], sizes = [64, 1], strides = [1, 1]} : vector<64x4xf32> to vector<64x1xf32>
    %49 = vector.broadcast %18 : f32 to vector<64x1xf32>
    %50 = arith.mulf %49, %48 : vector<64x1xf32>
    %51 = vector.broadcast %50 : vector<64x1xf32> to vector<64x8xf32>
    %52 = arith.addf %47, %51 : vector<64x8xf32>
    %53 = vector.broadcast %19 : vector<1x8xf32> to vector<64x8xf32>
    %54 = arith.addf %52, %53 : vector<64x8xf32>
    %cst_24 = arith.constant 0.000000e+00 : f32
    %55 = vector.broadcast %cst_24 : f32 to vector<64x8xf32>
    %56 = arith.cmpf oge, %54, %55 : vector<64x8xf32>
    %cst_25 = arith.constant 2.000000e-01 : f32
    %57 = vector.broadcast %cst_25 : f32 to vector<64x8xf32>
    %58 = arith.mulf %57, %54 : vector<64x8xf32>
    %59 = arith.select %56, %54, %58 : vector<64x8xi1>, vector<64x8xf32>
    %c0_26 = arith.constant 0 : index
    %c1 = arith.constant 1 : index
    %c0_27 = arith.constant 0 : index
    %c0_28 = arith.constant 0 : index
    %60 = vector.load %arg9[%c0_26, %c1, %c0_27, %c0_28] : memref<2x4x64x8xf32, #tpu.memory_space<vmem>>, vector<1x1x64x8xf32>
    %61 = vector.shape_cast %60 : vector<1x1x64x8xf32> to vector<64x8xf32>
    %62 = vector.shape_cast %59 : vector<64x8xf32> to vector<1x1x64x8xf32>
    tpu.vector_store %arg9[%c0_26, %c1, %c0_27, %c0_28], %62 {strides = array<i32>} : memref<2x4x64x8xf32, #tpu.memory_space<vmem>>, vector<1x1x64x8xf32>,
    %63 = vector.extract_strided_slice %26 {offsets = [0, 16], sizes = [64, 8], strides = [1, 1]} : vector<64x32xf32> to vector<64x8xf32>
    %64 = vector.broadcast %23 : vector<1x8xf32> to vector<64x8xf32>
    %65 = arith.mulf %63, %64 : vector<64x8xf32>
    %66 = vector.extract_strided_slice %25 {offsets = [0, 2], sizes = [64, 1], strides = [1, 1]} : vector<64x4xf32> to vector<64x1xf32>
    %67 = vector.broadcast %18 : f32 to vector<64x1xf32>
    %68 = arith.mulf %67, %66 : vector<64x1xf32>
    %69 = vector.broadcast %68 : vector<64x1xf32> to vector<64x8xf32>
    %70 = arith.addf %65, %69 : vector<64x8xf32>
    %71 = vector.broadcast %19 : vector<1x8xf32> to vector<64x8xf32>
    %72 = arith.addf %70, %71 : vector<64x8xf32>
    %cst_29 = arith.constant 0.000000e+00 : f32
    %73 = vector.broadcast %cst_29 : f32 to vector<64x8xf32>
    %74 = arith.cmpf oge, %72, %73 : vector<64x8xf32>
    %cst_30 = arith.constant 2.000000e-01 : f32
    %75 = vector.broadcast %cst_30 : f32 to vector<64x8xf32>
    %76 = arith.mulf %75, %72 : vector<64x8xf32>
    %77 = arith.select %74, %72, %76 : vector<64x8xi1>, vector<64x8xf32>
    %c0_31 = arith.constant 0 : index
    %c2 = arith.constant 2 : index
    %c0_32 = arith.constant 0 : index
    %c0_33 = arith.constant 0 : index
    %78 = vector.load %arg9[%c0_31, %c2, %c0_32, %c0_33] : memref<2x4x64x8xf32, #tpu.memory_space<vmem>>, vector<1x1x64x8xf32>
    %79 = vector.shape_cast %78 : vector<1x1x64x8xf32> to vector<64x8xf32>
    %80 = vector.shape_cast %77 : vector<64x8xf32> to vector<1x1x64x8xf32>
    tpu.vector_store %arg9[%c0_31, %c2, %c0_32, %c0_33], %80 {strides = array<i32>} : memref<2x4x64x8xf32, #tpu.memory_space<vmem>>, vector<1x1x64x8xf32>,
    %81 = vector.extract_strided_slice %26 {offsets = [0, 24], sizes = [64, 8], strides = [1, 1]} : vector<64x32xf32> to vector<64x8xf32>
    %82 = vector.broadcast %23 : vector<1x8xf32> to vector<64x8xf32>
    %83 = arith.mulf %81, %82 : vector<64x8xf32>
    %84 = vector.extract_strided_slice %25 {offsets = [0, 3], sizes = [64, 1], strides = [1, 1]} : vector<64x4xf32> to vector<64x1xf32>
    %85 = vector.broadcast %18 : f32 to vector<64x1xf32>
    %86 = arith.mulf %85, %84 : vector<64x1xf32>
    %87 = vector.broadcast %86 : vector<64x1xf32> to vector<64x8xf32>
    %88 = arith.addf %83, %87 : vector<64x8xf32>
    %89 = vector.broadcast %19 : vector<1x8xf32> to vector<64x8xf32>
    %90 = arith.addf %88, %89 : vector<64x8xf32>
    %cst_34 = arith.constant 0.000000e+00 : f32
    %91 = vector.broadcast %cst_34 : f32 to vector<64x8xf32>
    %92 = arith.cmpf oge, %90, %91 : vector<64x8xf32>
    %cst_35 = arith.constant 2.000000e-01 : f32
    %93 = vector.broadcast %cst_35 : f32 to vector<64x8xf32>
    %94 = arith.mulf %93, %90 : vector<64x8xf32>
    %95 = arith.select %92, %90, %94 : vector<64x8xi1>, vector<64x8xf32>
    %c0_36 = arith.constant 0 : index
    %c3 = arith.constant 3 : index
    %c0_37 = arith.constant 0 : index
    %c0_38 = arith.constant 0 : index
    %96 = vector.load %arg9[%c0_36, %c3, %c0_37, %c0_38] : memref<2x4x64x8xf32, #tpu.memory_space<vmem>>, vector<1x1x64x8xf32>
    %97 = vector.shape_cast %96 : vector<1x1x64x8xf32> to vector<64x8xf32>
    %98 = vector.shape_cast %95 : vector<64x8xf32> to vector<1x1x64x8xf32>
    tpu.vector_store %arg9[%c0_36, %c3, %c0_37, %c0_38], %98 {strides = array<i32>} : memref<2x4x64x8xf32, #tpu.memory_space<vmem>>, vector<1x1x64x8xf32>,
    %99 = vector.extract_strided_slice %20 {offsets = [1, 0, 0], sizes = [1, 1, 8], strides = [1, 1, 1]} : vector<2x1x8xf32> to vector<1x1x8xf32>
    %100 = vector.shape_cast %99 : vector<1x1x8xf32> to vector<1x8xf32>
    %101 = vector.extract_strided_slice %21 {offsets = [1, 0, 0], sizes = [1, 64, 4], strides = [1, 1, 1]} : vector<2x64x4xf32> to vector<1x64x4xf32>
    %102 = vector.shape_cast %101 : vector<1x64x4xf32> to vector<64x4xf32>
    %103 = vector.extract_strided_slice %17 {offsets = [64, 0], sizes = [64, 32], strides = [1, 1]} : vector<128x32xf32> to vector<64x32xf32>
    %104 = vector.extract_strided_slice %103 {offsets = [0, 0], sizes = [64, 8], strides = [1, 1]} : vector<64x32xf32> to vector<64x8xf32>
    %105 = vector.broadcast %100 : vector<1x8xf32> to vector<64x8xf32>
    %106 = arith.mulf %104, %105 : vector<64x8xf32>
    %107 = vector.extract_strided_slice %102 {offsets = [0, 0], sizes = [64, 1], strides = [1, 1]} : vector<64x4xf32> to vector<64x1xf32>
    %108 = vector.broadcast %18 : f32 to vector<64x1xf32>
    %109 = arith.mulf %108, %107 : vector<64x1xf32>
    %110 = vector.broadcast %109 : vector<64x1xf32> to vector<64x8xf32>
    %111 = arith.addf %106, %110 : vector<64x8xf32>
    %112 = vector.broadcast %19 : vector<1x8xf32> to vector<64x8xf32>
    %113 = arith.addf %111, %112 : vector<64x8xf32>
    %cst_39 = arith.constant 0.000000e+00 : f32
    %114 = vector.broadcast %cst_39 : f32 to vector<64x8xf32>
    %115 = arith.cmpf oge, %113, %114 : vector<64x8xf32>
    %cst_40 = arith.constant 2.000000e-01 : f32
    %116 = vector.broadcast %cst_40 : f32 to vector<64x8xf32>
    %117 = arith.mulf %116, %113 : vector<64x8xf32>
    %118 = arith.select %115, %113, %117 : vector<64x8xi1>, vector<64x8xf32>
    %c1_41 = arith.constant 1 : index
    %c0_42 = arith.constant 0 : index
    %c0_43 = arith.constant 0 : index
    %c0_44 = arith.constant 0 : index
    %119 = vector.load %arg9[%c1_41, %c0_42, %c0_43, %c0_44] : memref<2x4x64x8xf32, #tpu.memory_space<vmem>>, vector<1x1x64x8xf32>
    %120 = vector.shape_cast %119 : vector<1x1x64x8xf32> to vector<64x8xf32>
    %121 = vector.shape_cast %118 : vector<64x8xf32> to vector<1x1x64x8xf32>
    tpu.vector_store %arg9[%c1_41, %c0_42, %c0_43, %c0_44], %121 {strides = array<i32>} : memref<2x4x64x8xf32, #tpu.memory_space<vmem>>, vector<1x1x64x8xf32>,
    %122 = vector.extract_strided_slice %103 {offsets = [0, 8], sizes = [64, 8], strides = [1, 1]} : vector<64x32xf32> to vector<64x8xf32>
    %123 = vector.broadcast %100 : vector<1x8xf32> to vector<64x8xf32>
    %124 = arith.mulf %122, %123 : vector<64x8xf32>
    %125 = vector.extract_strided_slice %102 {offsets = [0, 1], sizes = [64, 1], strides = [1, 1]} : vector<64x4xf32> to vector<64x1xf32>
    %126 = vector.broadcast %18 : f32 to vector<64x1xf32>
    %127 = arith.mulf %126, %125 : vector<64x1xf32>
    %128 = vector.broadcast %127 : vector<64x1xf32> to vector<64x8xf32>
    %129 = arith.addf %124, %128 : vector<64x8xf32>
    %130 = vector.broadcast %19 : vector<1x8xf32> to vector<64x8xf32>
    %131 = arith.addf %129, %130 : vector<64x8xf32>
    %cst_45 = arith.constant 0.000000e+00 : f32
    %132 = vector.broadcast %cst_45 : f32 to vector<64x8xf32>
    %133 = arith.cmpf oge, %131, %132 : vector<64x8xf32>
    %cst_46 = arith.constant 2.000000e-01 : f32
    %134 = vector.broadcast %cst_46 : f32 to vector<64x8xf32>
    %135 = arith.mulf %134, %131 : vector<64x8xf32>
    %136 = arith.select %133, %131, %135 : vector<64x8xi1>, vector<64x8xf32>
    %c1_47 = arith.constant 1 : index
    %c1_48 = arith.constant 1 : index
    %c0_49 = arith.constant 0 : index
    %c0_50 = arith.constant 0 : index
    %137 = vector.load %arg9[%c1_47, %c1_48, %c0_49, %c0_50] : memref<2x4x64x8xf32, #tpu.memory_space<vmem>>, vector<1x1x64x8xf32>
    %138 = vector.shape_cast %137 : vector<1x1x64x8xf32> to vector<64x8xf32>
    %139 = vector.shape_cast %136 : vector<64x8xf32> to vector<1x1x64x8xf32>
    tpu.vector_store %arg9[%c1_47, %c1_48, %c0_49, %c0_50], %139 {strides = array<i32>} : memref<2x4x64x8xf32, #tpu.memory_space<vmem>>, vector<1x1x64x8xf32>,
    %140 = vector.extract_strided_slice %103 {offsets = [0, 16], sizes = [64, 8], strides = [1, 1]} : vector<64x32xf32> to vector<64x8xf32>
    %141 = vector.broadcast %100 : vector<1x8xf32> to vector<64x8xf32>
    %142 = arith.mulf %140, %141 : vector<64x8xf32>
    %143 = vector.extract_strided_slice %102 {offsets = [0, 2], sizes = [64, 1], strides = [1, 1]} : vector<64x4xf32> to vector<64x1xf32>
    %144 = vector.broadcast %18 : f32 to vector<64x1xf32>
    %145 = arith.mulf %144, %143 : vector<64x1xf32>
    %146 = vector.broadcast %145 : vector<64x1xf32> to vector<64x8xf32>
    %147 = arith.addf %142, %146 : vector<64x8xf32>
    %148 = vector.broadcast %19 : vector<1x8xf32> to vector<64x8xf32>
    %149 = arith.addf %147, %148 : vector<64x8xf32>
    %cst_51 = arith.constant 0.000000e+00 : f32
    %150 = vector.broadcast %cst_51 : f32 to vector<64x8xf32>
    %151 = arith.cmpf oge, %149, %150 : vector<64x8xf32>
    %cst_52 = arith.constant 2.000000e-01 : f32
    %152 = vector.broadcast %cst_52 : f32 to vector<64x8xf32>
    %153 = arith.mulf %152, %149 : vector<64x8xf32>
    %154 = arith.select %151, %149, %153 : vector<64x8xi1>, vector<64x8xf32>
    %c1_53 = arith.constant 1 : index
    %c2_54 = arith.constant 2 : index
    %c0_55 = arith.constant 0 : index
    %c0_56 = arith.constant 0 : index
    %155 = vector.load %arg9[%c1_53, %c2_54, %c0_55, %c0_56] : memref<2x4x64x8xf32, #tpu.memory_space<vmem>>, vector<1x1x64x8xf32>
    %156 = vector.shape_cast %155 : vector<1x1x64x8xf32> to vector<64x8xf32>
    %157 = vector.shape_cast %154 : vector<64x8xf32> to vector<1x1x64x8xf32>
    tpu.vector_store %arg9[%c1_53, %c2_54, %c0_55, %c0_56], %157 {strides = array<i32>} : memref<2x4x64x8xf32, #tpu.memory_space<vmem>>, vector<1x1x64x8xf32>,
    %158 = vector.extract_strided_slice %103 {offsets = [0, 24], sizes = [64, 8], strides = [1, 1]} : vector<64x32xf32> to vector<64x8xf32>
    %159 = vector.broadcast %100 : vector<1x8xf32> to vector<64x8xf32>
    %160 = arith.mulf %158, %159 : vector<64x8xf32>
    %161 = vector.extract_strided_slice %102 {offsets = [0, 3], sizes = [64, 1], strides = [1, 1]} : vector<64x4xf32> to vector<64x1xf32>
    %162 = vector.broadcast %18 : f32 to vector<64x1xf32>
    %163 = arith.mulf %162, %161 : vector<64x1xf32>
    %164 = vector.broadcast %163 : vector<64x1xf32> to vector<64x8xf32>
    %165 = arith.addf %160, %164 : vector<64x8xf32>
    %166 = vector.broadcast %19 : vector<1x8xf32> to vector<64x8xf32>
    %167 = arith.addf %165, %166 : vector<64x8xf32>
    %cst_57 = arith.constant 0.000000e+00 : f32
    %168 = vector.broadcast %cst_57 : f32 to vector<64x8xf32>
    %169 = arith.cmpf oge, %167, %168 : vector<64x8xf32>
    %cst_58 = arith.constant 2.000000e-01 : f32
    %170 = vector.broadcast %cst_58 : f32 to vector<64x8xf32>
    %171 = arith.mulf %170, %167 : vector<64x8xf32>
    %172 = arith.select %169, %167, %171 : vector<64x8xi1>, vector<64x8xf32>
    %c1_59 = arith.constant 1 : index
    %c3_60 = arith.constant 3 : index
    %c0_61 = arith.constant 0 : index
    %c0_62 = arith.constant 0 : index
    %173 = vector.load %arg9[%c1_59, %c3_60, %c0_61, %c0_62] : memref<2x4x64x8xf32, #tpu.memory_space<vmem>>, vector<1x1x64x8xf32>
    %174 = vector.shape_cast %173 : vector<1x1x64x8xf32> to vector<64x8xf32>
    %175 = vector.shape_cast %172 : vector<64x8xf32> to vector<1x1x64x8xf32>
    tpu.vector_store %arg9[%c1_59, %c3_60, %c0_61, %c0_62], %175 {strides = array<i32>} : memref<2x4x64x8xf32, #tpu.memory_space<vmem>>, vector<1x1x64x8xf32>,
    return
  }
  func.func @transform_0(%arg0: i32, %arg1: i32) -> (i32, i32, i32, i32) {
    %c0_i32 = arith.constant 0 : i32
    %c0_i32_0 = arith.constant 0 : i32
    %c0_i32_1 = arith.constant 0 : i32
    %c0_i32_2 = arith.constant 0 : i32
    return %arg1, %c0_i32, %c0_i32_0, %c0_i32_1 : i32, i32, i32, i32
  }
  func.func @transform_1(%arg0: i32, %arg1: i32) -> (i32, i32, i32, i32) {
    %c0_i32 = arith.constant 0 : i32
    %c0_i32_0 = arith.constant 0 : i32
    %c0_i32_1 = arith.constant 0 : i32
    %c0_i32_2 = arith.constant 0 : i32
    return %arg1, %c0_i32, %c0_i32_0, %c0_i32_1 : i32, i32, i32, i32
  }
  func.func @transform_2(%arg0: i32, %arg1: i32) -> (i32, i32) {
    %c0_i32 = arith.constant 0 : i32
    %c0_i32_0 = arith.constant 0 : i32
    return %c0_i32, %arg0 : i32, i32
  }
  func.func @transform_3(%arg0: i32, %arg1: i32) -> (i32, i32, i32) {
    %c0_i32 = arith.constant 0 : i32
    %c0_i32_0 = arith.constant 0 : i32
    return %arg1, %c0_i32, %arg0 : i32, i32, i32
  }
  func.func @transform_4(%arg0: i32, %arg1: i32) -> (i32, i32, i32) {
    %c0_i32 = arith.constant 0 : i32
    %c0_i32_0 = arith.constant 0 : i32
    %c0_i32_1 = arith.constant 0 : i32
    return %arg1, %c0_i32, %c0_i32_0 : i32, i32, i32
  }
  func.func @transform_5(%arg0: i32, %arg1: i32) -> (i32, i32) {
    %c0_i32 = arith.constant 0 : i32
    %c0_i32_0 = arith.constant 0 : i32
    return %c0_i32, %arg0 : i32, i32
  }
  func.func @transform_6(%arg0: i32, %arg1: i32) -> i32 {
    %c0_i32 = arith.constant 0 : i32
    %c0_i32_0 = arith.constant 0 : i32
    return %c0_i32 : i32
  }
  func.func @transform_7(%arg0: i32, %arg1: i32) -> (i32, i32, i32, i32) {
    %c0_i32 = arith.constant 0 : i32
    %c0_i32_0 = arith.constant 0 : i32
    %c0_i32_1 = arith.constant 0 : i32
    return %arg1, %c0_i32, %c0_i32_0, %arg0 : i32, i32, i32, i32
  }
}

</mosaic_0001>

<bundles_post_ra>
// kernel: tpu_custom_call.1
= control target key start
LH: loop header
LB: loop body
LE: loop exit
PB: predicated region body
PF: predicated region fallthrough
CT: control target
= control target key end

     0   :  { %s2189_s20 = smov 4   ;;  %s2190_s23 = smov 8   ;;  %vm927_vm0 = vcmask 1041408   ;;  %vm578_vm1 = vcmask 31744   ;;  %vm611_vm2 = vcmask 64512   ;;  %vm644_vm3 = vcmask 97280   ;;  %s4043_s0 = inlined_call_operand.vmem [shape: f32[2,10,10,4], index: 0, kind: input, shape index: {}]   ;;  %s4044_s1 = inlined_call_operand.vmem [shape: f32[2,1,1,4], index: 1, kind: input, shape index: {}]   ;;  %s4045_s2 = inlined_call_operand.vmem [shape: bf16[36,32], index: 2, kind: input, shape index: {}]   ;;  %s4046_s4 = inlined_call_operand.vmem [shape: f32[2,64,4], index: 4, kind: input, shape index: {}]   ;;  %s4047_s6 = inlined_call_operand.<no memory space> [shape: f32[1], index: 6, kind: input, shape index: {}]   ;;  %s4048_s3 = inlined_call_operand.vmem [shape: f32[2,1,8], index: 3, kind: input, shape index: {}]   ;;  %s4049_s5 = inlined_call_operand.vmem [shape: f32[1,8], index: 5, kind: input, shape index: {}]   ;;  %s4050_s7 = inlined_call_operand.vmem [shape: f32[2,4,64,8], index: 7, kind: output, shape index: {}]  }
   0x1   :  { %v32_v0 = vld [vmem:[%s4043_s0 + $0x20] sm:$0xff]  ;;  %v33_v1 = vld [vmem:[%s4043_s0 + $0x28] sm:$0x3]  ;;  %v34_v7 = vld [vmem:[%s4043_s0 + $0x30] sm:$0xff]  ;;  %s2192_s9 = smov 16   ;;  %s2193_s10 = smov 20  }
   0x2   :  { %v2253_v2 = vld [vmem:[%s4044_s1] ss:$0 sm:$0xff]  ;;  %v29_v6 = vld [vmem:[%s4043_s0 + $0x8] sm:$0x3]  ;;  %v35_v10 = vld [vmem:[%s4043_s0 + $0x38] sm:$0x3] }
   0x3   :  { %v86_v3 = vmul.f32 %v2253_v2, %v32_v0  ;;  %v87_v4 = vmul.f32 %v2253_v2, %v33_v1  ;;  %v28_v5 = vld [vmem:[%s4043_s0] sm:$0xff]  ;;  %v83_v9 = vmul.f32 %v2253_v2, %v29_v6  ;;  %v88_v11 = vmul.f32 %v2253_v2, %v34_v7  ;;  %v30_v12 = vld [vmem:[%s4043_s0 + $0x10] sm:$0xff]  ;;  %v31_v13 = vld [vmem:[%s4043_s0 + $0x18] sm:$0x3]  ;;  %s2194_s11 = smov 24   ;;  %s2201_s26 = smov 120  }
   0x4   :  { %v82_v8 = vmul.f32 %v2253_v2, %v28_v5  ;;  %v89_v15 = vmul.f32 %v2253_v2, %v35_v10  ;;  %v84_v16 = vmul.f32 %v2253_v2, %v30_v12  ;;  %v85_v17 = vmul.f32 %v2253_v2, %v31_v13  ;;  %v38_v18 = vld [vmem:[%s4043_s0 + $0x50] sm:$0xff]  ;;  %v39_v19 = vld [vmem:[%s4043_s0 + $0x58] sm:$0x3]  ;;  %v36_v20 = vld [vmem:[%s4043_s0 + $0x40] sm:$0xff]  ;;  %s2202_s29 = smov 112   ;;  %s2203_s22 = smov 104  }
   0x5   :  { %v2278_v14 = vpack.c.bf16 %v87_v4, %v86_v3  ;;  %v92_v22 = vmul.f32 %v2253_v2, %v38_v18  ;;  %v93_v23 = vmul.f32 %v2253_v2, %v39_v19  ;;  %v37_v24 = vld [vmem:[%s4043_s0 + $0x48] sm:$0x3]  ;;  %v90_v25 = vmul.f32 %v2253_v2, %v36_v20  ;;  %v42_v34 = vld [vmem:[%s4043_s0 + $0x70] sm:$0xff]  ;;  %v43_v39 = vld [vmem:[%s4043_s0 + $0x78] sm:$0x3] }
   0x6   :  { %v2292_v21 = vpack.c.bf16 %v83_v9, %v82_v8  ;;  %v2302_v28 = vpack.c.bf16 %v89_v15, %v88_v11  ;;  %v2304_v29 = vpack.c.bf16 %v85_v17, %v84_v16  ;;  %v91_v33 = vmul.f32 %v2253_v2, %v37_v24  ;;  %v40_v44 = vld [vmem:[%s4043_s0 + $0x60] sm:$0xff]  ;;  %v41_v49 = vld [vmem:[%s4043_s0 + $0x68] sm:$0x3]  ;;  %v51_v50 = vld [vmem:[%s4043_s0 + $0xb8] sm:$0x3] }
   0x7   :  { %v157_v26 = vshrl.u32 %v2278_v14, 16  ;;  %v159_v27 = vshll.u32 %v2278_v14, 16  ;;  %v2308_v32 = vpack.c.bf16 %v93_v23, %v92_v22  ;;  %v96_v48 = vmul.f32 %v2253_v2, %v42_v34  ;;  %v50_v55 = vld [vmem:[%s4043_s0 + $0xb0] sm:$0xff]  ;;  %v2344_v56 = vld [vmem:[%s4044_s1 + $0x1] ss:$0 sm:$0xff] }
   0x8   :  { %v143_v30 = vshrl.u32 %v2292_v21, 16  ;;  %v145_v31 = vshll.u32 %v2292_v21, 16  ;;  %v164_v36 = vshrl.u32 %v2302_v28, 16  ;;  %v166_v37 = vshll.u32 %v2302_v28, 16  ;;  %v48_v57 = vld [vmem:[%s4043_s0 + $0xa0] sm:$0xff]  ;;  %v54_v4 = vld [vmem:[%s4043_s0 + $0xd0] sm:$0xff] }
   0x9   :  { %v161_v35 = vrot.slane %v159_v27, 1  ;;  %v150_v38 = vshrl.u32 %v2304_v29, 16  ;;  %v152_v41 = vshll.u32 %v2304_v29, 16  ;;  %v178_v42 = vshrl.u32 %v2308_v32, 16  ;;  %v49_v62 = vld [vmem:[%s4043_s0 + $0xa8] sm:$0x3] }
   0xa   :  { %v147_v40 = vrot.slane %v145_v31, 1  ;;  %v180_v43 = vshll.u32 %v2308_v32, 16  ;;  %v168_v46 = vrot.slane %v166_v37, 1  ;;  %v2328_v47 = vpack.c.bf16 %v91_v33, %v90_v25  ;;  %v55_v5 = vld [vmem:[%s4043_s0 + $0xd8] sm:$0x3]  ;;  %v52_v15 = vld [vmem:[%s4043_s0 + $0xc0] sm:$0xff] }
   0xb   :  { %v2326_v45 = vor.u32 %v161_v35, %v157_v26  ;;  %v154_v52 = vrot.slane %v152_v41, 1  ;;  %v97_v54 = vmul.f32 %v2253_v2, %v43_v39  ;;  %v94_v61 = vmul.f32 %v2253_v2, %v40_v44  ;;  %v53_v25 = vld [vmem:[%s4043_s0 + $0xc8] sm:$0x3]  ;;  %v58_v31 = vld [vmem:[%s4043_s0 + $0xf0] sm:$0xff]  ;;  %v59_v33 = vld [vmem:[%s4043_s0 + $0xf8] sm:$0x3] }
   0xc   :  { %v148_v51 = vor.u32 %v147_v40, %v143_v30  ;;  %v182_v53 = vrot.slane %v180_v43, 1  ;;  %v2351_v58 = vor.u32 %v168_v46, %v164_v36  ;;  %v171_v59 = vshrl.u32 %v2328_v47, 16  ;;  %v57_v43 = vld [vmem:[%s4043_s0 + $0xe8] sm:$0x3]  ;;  %v62_v44 = vld [vmem:[%s4043_s0 + $0x110] sm:$0xff] }
   0xd   :  { %258 = vrot.lane.b32.xlu1 %v2326_v45, %s2189_s20  ;;  %v173_v60 = vshll.u32 %v2328_v47, 16  ;;  %v2360_v63 = vor.u32 %v154_v52, %v150_v38  ;;  %v2364_v1 = vpack.c.bf16 %v97_v54, %v96_v48  ;;  %v95_v3 = vmul.f32 %v2253_v2, %v41_v49  ;;  %v56_v38 = vld [vmem:[%s4043_s0 + $0xe0] sm:$0xff] }
   0xe   :  { %254 = vrot.lane.b32.xlu0 %v148_v51, %s2189_s20  ;;  %v2362_v0 = vor.u32 %v182_v53, %v178_v42  ;;  %v104_v7 = vmul.f32 %v2344_v56, %v50_v55  ;;  %v105_v8 = vmul.f32 %v2344_v56, %v51_v50  ;;  %v102_v9 = vmul.f32 %v2344_v56, %v48_v57  ;;  %v63_v51 = vld [vmem:[%s4043_s0 + $0x118] sm:$0x3]  ;;  %v60_v55 = vld [vmem:[%s4043_s0 + $0x100] sm:$0xff] }
   0xf   :  { %v175_v6 = vrot.slane %v173_v60, 1  ;;  %v192_v10 = vshrl.u32 %v2364_v1, 16  ;;  %v194_v11 = vshll.u32 %v2364_v1, 16  ;;  %v2378_v12 = vpack.c.bf16 %v95_v3, %v94_v61 }
  0x10   :  { %v103_v13 = vmul.f32 %v2344_v56, %v49_v62  ;;  %v2388_v17 = vpack.c.bf16 %v105_v8, %v104_v7  ;;  %v108_v18 = vmul.f32 %v2344_v56, %v54_v4  ;;  %v109_v19 = vmul.f32 %v2344_v56, %v55_v5  ;;  %v61_v62 = vld [vmem:[%s4043_s0 + $0x108] sm:$0x3] }
  0x11   :  { %260 = vrot.lane.b32.xlu1 %v2351_v58, %s2189_s20  ;;  %v2386_v16 = vor.u32 %v175_v6, %v171_v59  ;;  %v196_v20 = vrot.slane %v194_v11, 1  ;;  %v185_v22 = vshrl.u32 %v2378_v12, 16  ;;  %v187_v23 = vshll.u32 %v2378_v12, 16 }
  0x12   :  { %256 = vrot.lane.b32.xlu0 %v2360_v63, %s2189_s20  ;;  %v2396_v24 = vpack.c.bf16 %v103_v13, %v102_v9  ;;  %v208_v26 = vshll.u32 %v2388_v17, 16  ;;  %v2402_v27 = vpack.c.bf16 %v109_v19, %v108_v18  ;;  %v106_v30 = vmul.f32 %v2344_v56, %v52_v15 }
  0x13   :  { %v2411_v34 = vor.u32 %v196_v20, %v192_v10  ;;  %v189_v35 = vrot.slane %v187_v23, 1  ;;  %v206_v36 = vshrl.u32 %v2388_v17, 16  ;;  %v107_v42 = vmul.f32 %v2344_v56, %v53_v25 }
  0x14   :  { %4083 = vst [vmem:[#allocation3_spill] sm:$0xff] %v2396_v24  ;;  %v201_v37 = vshll.u32 %v2396_v24, 16  ;;  %v210_v39 = vrot.slane %v208_v26, 1  ;;  %v199_v40 = vshrl.u32 %v2396_v24, 16  ;;  %v222_v41 = vshll.u32 %v2402_v27, 16 }
  0x15   :  { %264 = vrot.lane.b32.xlu1 %v2362_v0, %s2189_s20  ;;  %v2431_v46 = vor.u32 %v189_v35, %v185_v22  ;;  %v112_v49 = vmul.f32 %v2344_v56, %v58_v31  ;;  %v113_v50 = vmul.f32 %v2344_v56, %v59_v33  ;;  %v220_v52 = vshrl.u32 %v2402_v27, 16 }
  0x16   :  { %262 = vrot.lane.b32.xlu0 %v2386_v16, %s2189_s20  ;;  %v203_v48 = vrot.slane %v201_v37, 1  ;;  %v2439_v53 = vpack.c.bf16 %v107_v42, %v106_v30  ;;  %v110_v54 = vmul.f32 %v2344_v56, %v56_v38  ;;  %v224_v57 = vrot.slane %v222_v41, 1 }
  0x17   :  { %v2445_v59 = vpack.c.bf16 %v113_v50, %v112_v49  ;;  %v111_v60 = vmul.f32 %v2344_v56, %v57_v43  ;;  %v116_v61 = vmul.f32 %v2344_v56, %v62_v44  ;;  %v2454_v3 = vor.u32 %v210_v39, %v206_v36 }
  0x18   :  { %4084 = vst [vmem:[#allocation4_spill] sm:$0xff] %v2439_v53  ;;  %v204_v4 = vor.u32 %v203_v48, %v199_v40  ;;  %v215_v5 = vshll.u32 %v2439_v53, 16  ;;  %v117_v6 = vmul.f32 %v2344_v56, %v63_v51  ;;  %v213_v7 = vshrl.u32 %v2439_v53, 16 }
  0x19   :  { %4085 = vst [vmem:[#allocation5_spill] sm:$0xff] %v2445_v59  ;;  %268 = vrot.lane.b32.xlu1 %v2411_v34, %s2189_s20  ;;  %v236_v8 = vshll.u32 %v2445_v59, 16  ;;  %v2462_v9 = vpack.c.bf16 %v111_v60, %v110_v54  ;;  %v114_v10 = vmul.f32 %v2344_v56, %v60_v55  ;;  %v115_v15 = vmul.f32 %v2344_v56, %v61_v62 }
  0x1a   :  { %266 = vrot.lane.b32.xlu0 %v2431_v46, %s2189_s20  ;;  %v217_v11 = vrot.slane %v215_v5, 1  ;;  %v2465_v13 = vpack.c.bf16 %v117_v6, %v116_v61  ;;  %v2468_v18 = vor.u32 %v224_v57, %v220_v52  ;;  %v234_v20 = vshrl.u32 %v2445_v59, 16 }
  0x1b   :  { %4086 = vst [vmem:[#allocation6_spill] sm:$0xff] %v2462_v9  ;;  %v229_v19 = vshll.u32 %v2462_v9, 16  ;;  %v238_v22 = vrot.slane %v236_v8, 1  ;;  %v2475_v25 = vpack.c.bf16 %v115_v15, %v114_v10  ;;  %v227_v30 = vshrl.u32 %v2462_v9, 16  ;;  %v45_v8 = vld [vmem:[%s4043_s0 + $0x88] sm:$0x3] }
  0x1c   :  { %4087 = vst [vmem:[#allocation7_spill] sm:$0xff] %v2465_v13  ;;  %v250_v23 = vshll.u32 %v2465_v13, 16  ;;  %v2478_v26 = vor.u32 %v217_v11, %v213_v7  ;;  %v248_v36 = vshrl.u32 %v2465_v13, 16  ;;  %v303_v43 = vrot.slane %v2304_v29, 1  ;;  %v44_v7 = vld [vmem:[%s4043_s0 + $0x80] sm:$0xff] }
  0x1d   :  { %272 = vrot.lane.b32.xlu1 %v2454_v3, %s2189_s20  ;;  %4088 = vst [vmem:[#allocation8_spill] sm:$0xff] %v2475_v25  ;;  %v231_v31 = vrot.slane %v229_v19, 1  ;;  %v243_v33 = vshll.u32 %v2475_v25, 16  ;;  %v2484_v35 = vor.u32 %v238_v22, %v234_v20  ;;  %v241_v39 = vshrl.u32 %v2475_v25, 16  ;;  %v64_v19 = vld [vmem:[%s4043_s0 + $0x120] sm:$0xff] }
  0x1e   :  { %270 = vrot.lane.b32.xlu0 %v204_v4, %s2189_s20  ;;  %v252_v37 = vrot.slane %v250_v23, 1  ;;  %v302_v44 = vrot.slane %v2292_v21, 1  ;;  %v2510_v48 = vrot.slane %v2302_v28, 1  ;;  %v2514_v49 = vrot.slane %v2278_v14, 1  ;;  %v65_v20 = vld [vmem:[%s4043_s0 + $0x128] sm:$0x3] }
  0x1f   :  { %v2489_v38 = vor.u32 %v231_v31, %v227_v30  ;;  %v245_v40 = vrot.slane %v243_v33, 1  ;;  %v2519_v50 = vrot.slane %v2308_v32, 1  ;;  %v2524_v51 = vrot.slane %v2328_v47, 1 }
  0x20   :  { %v2494_v41 = vor.u32 %v252_v37, %v248_v36  ;;  %v2529_v52 = vrot.slane %v2364_v1, 1  ;;  %v2534_v54 = vrot.slane %v2378_v12, 1  ;;  %v311_v55 = vrot.slane %v2388_v17, 1 }
  0x21   :  { %276 = vrot.lane.b32.xlu1 %v2468_v18, %s2189_s20  ;;  %v2498_v42 = vor.u32 %v245_v40, %v241_v39  ;;  %v310_v57 = vrot.slane %v2396_v24, 1  ;;  %v2546_v60 = vrot.slane %v2402_v27, 1  ;;  %v2550_v61 = vrot.slane %v2439_v53, 1 }
  0x22   :  { %274 = vrot.lane.b32.xlu0 %v2478_v26, %s2189_s20  ;;  %v2555_v62 = vrot.slane %v2445_v59, 1  ;;  %v2560_v4 = vrot.slane %v2462_v9, 1  ;;  %v2565_v5 = vrot.slane %v2465_v13, 1  ;;  %v2570_v6 = vrot.slane %v2475_v25, 1 }
  0x23   :  { %v98_v10 = vmul.f32 %v2253_v2, %v44_v7  ;;  %v99_v11 = vmul.f32 %v2253_v2, %v45_v8  ;;  %v118_v22 = vmul.f32 %v2344_v56, %v64_v19  ;;  %v119_v23 = vmul.f32 %v2344_v56, %v65_v20 }
  0x24   :  { %vm677_vm4 = vcmask 130048   ;;  %vm710_vm5 = vcmask 162816   ;;  %vm743_vm6 = vcmask 195584   ;;  %vm776_vm7 = vcmask 228352  }
  0x25   :  { %280 = vrot.lane.b32.xlu1 %v2484_v35, %s2189_s20  ;;  %v2589_v15 = vpack.c.bf16 %v99_v11, %v98_v10  ;;  %v2607_v30 = vpack.c.bf16 %v119_v23, %v118_v22  ;;  %vm809_vm8 = vcmask 261120   ;;  %vm902_vm9 = vcmask 293888  }
  0x26   :  { %278 = vrot.lane.b32.xlu0 %v2489_v38, %s2189_s20 }
  0x27   :  { %v387_v31 = vshll.u32 %v2589_v15, 16  ;;  %v385_v33 = vshrl.u32 %v2589_v15, 16 }
  0x29   :  { %284 = vrot.lane.b32.xlu1 %v2494_v41, %s2189_s20  ;;  %v389_v36 = vrot.slane %v387_v31, 1 }
  0x2a   :  { %282 = vrot.lane.b32.xlu0 %v2498_v42, %s2189_s20  ;;  %s2191_s20 = smov 12  }
  0x2b   :  { %v2624_v37 = vor.u32 %v389_v36, %v385_v33  ;;  %v4051_v36 = vrot.slane %v2589_v15, 1 }
  0x2d   :  { %320 = vrot.lane.b32.xlu1 %v303_v43, %s2190_s23 }
  0x2e   :  { %318 = vrot.lane.b32.xlu0 %v302_v44, %s2190_s23  ;;  %v392_v44 = vshrl.u32 %v2607_v30, 16 }
  0x31   :  { %324 = vrot.lane.b32.xlu1 %v2510_v48, %s2190_s23 }
  0x32   :  { %322 = vrot.lane.b32.xlu0 %v2514_v49, %s2190_s23 }
  0x35   :  { %328 = vrot.lane.b32.xlu1 %v2519_v50, %s2190_s23 }
  0x36   :  { %326 = vrot.lane.b32.xlu0 %v2524_v51, %s2190_s23 }
  0x39   :  { %332 = vrot.lane.b32.xlu1 %v2529_v52, %s2190_s23 }
  0x3a   :  { %330 = vrot.lane.b32.xlu0 %v2534_v54, %s2190_s23 }
  0x3d   :  { %336 = vrot.lane.b32.xlu1 %v311_v55, %s2190_s23 }
  0x3e   :  { %334 = vrot.lane.b32.xlu0 %v310_v57, %s2190_s23 }
  0x41   :  { %340 = vrot.lane.b32.xlu1 %v2546_v60, %s2190_s23 }
  0x42   :  { %338 = vrot.lane.b32.xlu0 %v2550_v61, %s2190_s23 }
  0x45   :  { %344 = vrot.lane.b32.xlu1 %v2555_v62, %s2190_s23 }
  0x46   :  { %342 = vrot.lane.b32.xlu0 %v2560_v4, %s2190_s23 }
  0x49   :  { %348 = vrot.lane.b32.xlu1 %v2565_v5, %s2190_s23 }
  0x4a   :  { %346 = vrot.lane.b32.xlu0 %v2570_v6, %s2190_s23 }
  0x4d   :  { %354 = vrot.lane.b32.xlu1 %v2278_v14, %s2191_s20 }
  0x4e   :  { %352 = vrot.lane.b32.xlu0 %v2304_v29, %s2191_s20 }
  0x51   :  { %358 = vrot.lane.b32.xlu1 %v2328_v47, %s2191_s20 }
  0x52   :  { %356 = vrot.lane.b32.xlu0 %v2302_v28, %s2191_s20 }
  0x55   :  { %362 = vrot.lane.b32.xlu1 %v2378_v12, %s2191_s20 }
  0x56   :  { %360 = vrot.lane.b32.xlu0 %v2308_v32, %s2191_s20 }
  0x59   :  { %366 = vrot.lane.b32.xlu1 %v2589_v15, %s2191_s20 }
  0x5a   :  { %364 = vrot.lane.b32.xlu0 %v2364_v1, %s2191_s20 }
  0x5d   :  { %370 = vrot.lane.b32.xlu1 %v2439_v53, %s2191_s20 }
  0x5e   :  { %368 = vrot.lane.b32.xlu0 %v2388_v17, %s2191_s20 }
  0x61   :  { %374 = vrot.lane.b32.xlu1 %v2462_v9, %s2191_s20 }
  0x62   :  { %372 = vrot.lane.b32.xlu0 %v2402_v27, %s2191_s20 }
  0x65   :  { %378 = vrot.lane.b32.xlu1 %v2475_v25, %s2191_s20 }
  0x66   :  { %376 = vrot.lane.b32.xlu0 %v2445_v59, %s2191_s20 }
  0x69   :  { %382 = vrot.lane.b32.xlu1 %v2607_v30, %s2191_s20 }
  0x6a   :  { %380 = vrot.lane.b32.xlu0 %v2465_v13, %s2191_s20 }
  0x6d   :  { %400 = vrot.lane.b32.xlu1 %v2326_v45, %s2192_s9 }
  0x6e   :  { %398 = vrot.lane.b32.xlu0 %v2360_v63, %s2192_s9  ;;  %v394_v63 = vshll.u32 %v2607_v30, 16 }
  0x70   :  { %v396_v57 = vrot.slane %v394_v63, 1 }
  0x71   :  { %404 = vrot.lane.b32.xlu1 %v2386_v16, %s2192_s9 }
  0x72   :  { %402 = vrot.lane.b32.xlu0 %v2351_v58, %s2192_s9 }
  0x75   :  { %408 = vrot.lane.b32.xlu1 %v2431_v46, %s2192_s9 }
  0x76   :  { %406 = vrot.lane.b32.xlu0 %v2362_v0, %s2192_s9 }
  0x79   :  { %412 = vrot.lane.b32.xlu1 %v2624_v37, %s2192_s9 }
  0x7a   :  { %410 = vrot.lane.b32.xlu0 %v2411_v34, %s2192_s9 }
  0x7d   :  { %416 = vrot.lane.b32.xlu1 %v2478_v26, %s2192_s9 }
  0x7e   :  { %414 = vrot.lane.b32.xlu0 %v2454_v3, %s2192_s9  ;;  %v2652_v3 = vor.u32 %v396_v57, %v392_v44 }
  0x7f   :  { %v2637_v39 = vpop.permute.xlu1 %258 }
  0x80   :  { %v2639_v40 = vpop.permute.xlu0 %254 }
  0x81   :  { %420 = vrot.lane.b32.xlu1 %v2489_v38, %s2192_s9 }
  0x82   :  { %418 = vrot.lane.b32.xlu0 %v2468_v18, %s2192_s9 }
  0x83   :  { %v2646_v7 = vpop.permute.xlu1 %260 }
  0x84   :  { %v2648_v8 = vpop.permute.xlu0 %256 }
  0x85   :  { %424 = vrot.lane.b32.xlu1 %v2498_v42, %s2192_s9 }
  0x86   :  { %422 = vrot.lane.b32.xlu0 %v2484_v35, %s2192_s9 }
  0x87   :  { %v2656_v10 = vpop.permute.xlu1 %264 }
  0x88   :  { %v2658_v11 = vpop.permute.xlu0 %262 }
  0x89   :  { %428 = vrot.lane.b32.xlu1 %v2652_v3, %s2192_s9 }
  0x8a   :  { %426 = vrot.lane.b32.xlu0 %v2494_v41, %s2192_s9 }
  0x8b   :  { %v2664_v19 = vpop.permute.xlu1 %268 }
  0x8c   :  { %v2666_v20 = vpop.permute.xlu0 %266 }
  0x8d   :  { %434 = vrot.lane.b32.xlu1 %v2514_v49, %s2193_s10 }
  0x8e   :  { %432 = vrot.lane.b32.xlu0 %v303_v43, %s2193_s10 }
  0x8f   :  { %v2673_v22 = vpop.permute.xlu1 %272 }
  0x90   :  { %v2675_v23 = vpop.permute.xlu0 %270 }
  0x91   :  { %4089 = vst [vmem:[#allocation9_spill] sm:$0xff] %v2675_v23  ;;  %438 = vrot.lane.b32.xlu1 %v2524_v51, %s2193_s10 }
  0x92   :  { %436 = vrot.lane.b32.xlu0 %v2510_v48, %s2193_s10 }
  0x93   :  { %v2681_v31 = vpop.permute.xlu1 %276 }
  0x94   :  { %4090 = vst [vmem:[#allocation10_spill] sm:$0xff] %v2681_v31  ;;  %v2683_v33 = vpop.permute.xlu0 %274 }
  0x95   :  { %4091 = vst [vmem:[#allocation11_spill] sm:$0xff] %v2683_v33  ;;  %442 = vrot.lane.b32.xlu1 %v2534_v54, %s2193_s10 }
  0x96   :  { %440 = vrot.lane.b32.xlu0 %v2519_v50, %s2193_s10 }
  0x97   :  { %v2690_v43 = vpop.permute.xlu1 %280 }
  0x98   :  { %4092 = vst [vmem:[#allocation12_spill] sm:$0xff] %v2690_v43  ;;  %v2692_v63 = vpop.permute.xlu0 %278 }
  0x99   :  { %4093 = vst [vmem:[#allocation13_spill] sm:$0xff] %v2692_v63  ;;  %446 = vrot.lane.b32.xlu1 %v4051_v36, %s2193_s10 }
  0x9a   :  { %444 = vrot.lane.b32.xlu0 %v2529_v52, %s2193_s10 }
  0x9b   :  { %v2699_v44 = vpop.permute.xlu1 %284 }
  0x9c   :  { %4094 = vst [vmem:[#allocation14_spill] sm:$0xff] %v2699_v44  ;;  %v2701_v57 = vpop.permute.xlu0 %282  ;;  %v4052_v44 = vrot.slane %v2607_v30, 1 }
  0x9d   :  { %4095 = vst [vmem:[#allocation15_spill] sm:$0xff] %v2701_v57  ;;  %450 = vrot.lane.b32.xlu1 %v2550_v61, %s2193_s10 }
  0x9e   :  { %448 = vrot.lane.b32.xlu0 %v311_v55, %s2193_s10 }
  0x9f   :  { %v2708_v43 = vpop.permute.xlu1 %320 }
  0xa0   :  { %v2710_v63 = vpop.permute.xlu0 %318 }
  0xa1   :  { %454 = vrot.lane.b32.xlu1 %v2560_v4, %s2193_s10 }
  0xa2   :  { %452 = vrot.lane.b32.xlu0 %v2546_v60, %s2193_s10 }
  0xa3   :  { %v2716_v36 = vpop.permute.xlu1 %324 }
  0xa4   :  { %4096 = vst [vmem:[#allocation16_spill] sm:$0xff] %v2716_v36  ;;  %v2718_v57 = vpop.permute.xlu0 %322 }
  0xa5   :  { %4097 = vst [vmem:[#allocation17_spill] sm:$0xff] %v2718_v57  ;;  %458 = vrot.lane.b32.xlu1 %v2570_v6, %s2193_s10 }
  0xa6   :  { %456 = vrot.lane.b32.xlu0 %v2555_v62, %s2193_s10 }
  0xa7   :  { %v2725_v55 = vpop.permute.xlu1 %328 }
  0xa8   :  { %4098 = vst [vmem:[#allocation18_spill] sm:$0xff] %v2725_v55  ;;  %v2727_v33 = vpop.permute.xlu0 %326 }
  0xa9   :  { %4099 = vst [vmem:[#allocation19_spill] sm:$0xff] %v2727_v33  ;;  %462 = vrot.lane.b32.xlu1 %v4052_v44, %s2193_s10  ;;  %v46_v33 = vld [vmem:[%s4043_s0 + $0x90] sm:$0xff]  ;;  %v47_v44 = vld [vmem:[%s4043_s0 + $0x98] sm:$0x3] }
  0xaa   :  { %460 = vrot.lane.b32.xlu0 %v2565_v5, %s2193_s10  ;;  %v101_v31 = vmul.f32 %v2253_v2, %v47_v44 }
  0xab   :  { %v2734_v57 = vpop.permute.xlu1 %332 }
  0xac   :  { %4100 = vst [vmem:[#allocation20_spill] sm:$0xff] %v2734_v57  ;;  %v2736_v36 = vpop.permute.xlu0 %330 }
  0xad   :  { %4101 = vst [vmem:[#allocation21_spill] sm:$0xff] %v2736_v36  ;;  %468 = vrot.lane.b32.xlu1 %v2302_v28, %s2194_s11  ;;  %v100_v36 = vmul.f32 %v2253_v2, %v46_v33 }
  0xae   :  { %466 = vrot.lane.b32.xlu0 %v2278_v14, %s2194_s11 }
  0xaf   :  { %v2748_v55 = vpop.permute.xlu1 %336 }
  0xb0   :  { %4102 = vst [vmem:[#allocation22_spill] sm:$0xff] %v2748_v55  ;;  %v2750_v57 = vpop.permute.xlu0 %334  ;;  %v2764_v55 = vpack.c.bf16 %v101_v31, %v100_v36  ;;  %v66_v31 = vld [vmem:[%s4043_s0 + $0x130] sm:$0xff]  ;;  %v67_v36 = vld [vmem:[%s4043_s0 + $0x138] sm:$0x3]  ;;  %s2195_s0 = smov 28  }
  0xb1   :  { %4103 = vst [vmem:[#allocation23_spill] sm:$0xff] %v2750_v57  ;;  %472 = vrot.lane.b32.xlu1 %v2308_v32, %s2194_s11 }
  0xb2   :  { %470 = vrot.lane.b32.xlu0 %v2328_v47, %s2194_s11 }
  0xb3   :  { %v2758_v24 = vpop.permute.xlu1 %340 }
  0xb4   :  { %4104 = vst [vmem:[#allocation24_spill] sm:$0xff] %v2758_v24  ;;  %v2760_v23 = vpop.permute.xlu0 %338 }
  0xb5   :  { %4105 = vst [vmem:[#allocation25_spill] sm:$0xff] %v2760_v23  ;;  %476 = vrot.lane.b32.xlu1 %v2364_v1, %s2194_s11 }
  0xb6   :  { %474 = vrot.lane.b32.xlu0 %v2378_v12, %s2194_s11 }
  0xb7   :  { %v2768_v57 = vpop.permute.xlu1 %344 }
  0xb8   :  { %4106 = vst [vmem:[#allocation26_spill] sm:$0xff] %v2768_v57  ;;  %v2770_v33 = vpop.permute.xlu0 %342 }
  0xb9   :  { %4107 = vst [vmem:[#allocation27_spill] sm:$0xff] %v2770_v33  ;;  %480 = vrot.lane.b32.xlu1 %v2764_v55, %s2194_s11 }
  0xba   :  { %478 = vrot.lane.b32.xlu0 %v2589_v15, %s2194_s11 }
  0xbb   :  { %v2776_v2 = vpop.permute.xlu1 %348 }
  0xbc   :  { %4108 = vst [vmem:[#allocation28_spill] sm:$0xff] %v2776_v2  ;;  %v2778_v44 = vpop.permute.xlu0 %346  ;;  %v121_v2 = vmul.f32 %v2344_v56, %v67_v36 }
  0xbd   :  { %4109 = vst [vmem:[#allocation29_spill] sm:$0xff] %v2778_v44  ;;  %484 = vrot.lane.b32.xlu1 %v2402_v27, %s2194_s11  ;;  %v120_v44 = vmul.f32 %v2344_v56, %v66_v31 }
  0xbe   :  { %482 = vrot.lane.b32.xlu0 %v2439_v53, %s2194_s11 }
  0xbf   :  { %v2790_v33 = vpop.permute.xlu1 %354  ;;  %v2806_v53 = vpack.c.bf16 %v121_v2, %v120_v44  ;;  %v501_v2 = vshll.u32 %v2764_v55, 16 }
  0xc0   :  { %v2792_v57 = vpop.permute.xlu0 %352 }
  0xc1   :  { %488 = vrot.lane.b32.xlu1 %v2445_v59, %s2194_s11 }
  0xc2   :  { %486 = vrot.lane.b32.xlu0 %v2462_v9, %s2194_s11  ;;  %v503_v9 = vrot.slane %v501_v2, 1 }
  0xc3   :  { %v2800_v23 = vpop.permute.xlu1 %358 }
  0xc4   :  { %v2802_v24 = vpop.permute.xlu0 %356 }
  0xc5   :  { %492 = vrot.lane.b32.xlu1 %v2465_v13, %s2194_s11  ;;  %v499_v13 = vshrl.u32 %v2764_v55, 16 }
  0xc6   :  { %490 = vrot.lane.b32.xlu0 %v2475_v25, %s2194_s11 }
  0xc7   :  { %v2810_v59 = vpop.permute.xlu1 %362 }
  0xc8   :  { %v2812_v31 = vpop.permute.xlu0 %360 }
  0xc9   :  { %496 = vrot.lane.b32.xlu1 %v2806_v53, %s2194_s11 }
  0xca   :  { %494 = vrot.lane.b32.xlu0 %v2607_v30, %s2194_s11 }
  0xcb   :  { %v2818_v56 = vpop.permute.xlu1 %366 }
  0xcc   :  { %v2820_v36 = vpop.permute.xlu0 %364 }
  0xcd   :  { %4110 = vst [vmem:[#allocation30_spill] sm:$0xff] %v2820_v36  ;;  %514 = vrot.lane.b32.xlu1 %v2351_v58, %s2195_s0 }
  0xce   :  { %512 = vrot.lane.b32.xlu0 %v2326_v45, %s2195_s0  ;;  %v504_v45 = vor.u32 %v503_v9, %v499_v13  ;;  %v508_v9 = vshll.u32 %v2806_v53, 16  ;;  %v2185_v13 = vld [vmem:[%s4045_s2 + $0x8] sm:$0xff]  }
  0xcf   :  { %v2827_v44 = vpop.permute.xlu1 %370 }
  0xd0   :  { %4111 = vst [vmem:[#allocation31_spill] sm:$0xff] %v2827_v44  ;;  %v2829_v25 = vpop.permute.xlu0 %368  ;;  %v4069_v44 = vmov 3  }
  0xd1   :  { %4112 = vst [vmem:[#allocation32_spill] sm:$0xff] %v2829_v25  ;;  %518 = vrot.lane.b32.xlu1 %v2362_v0, %s2195_s0 }
  0xd2   :  { %516 = vrot.lane.b32.xlu0 %v2386_v16, %s2195_s0  ;;  %v2184_v16 = vld [vmem:[%s4045_s2 + $0x10] ss:$0 sps:$4 sm:$0x33]  }
  0xd3   :  { %v2836_v36 = vpop.permute.xlu1 %374  ;;  %2152 = vmatprep.subr.msk.bf16.mxu0 %vm927_vm0, %v2184_v16  ;;  %2153 = vmatprep.subr.msk.bf16.mxu1 %vm927_vm0, %v2184_v16 }
  0xd4   :  { %4113 = vst [vmem:[#allocation33_spill] sm:$0xff] %v2836_v36  ;;  %v2838_v58 = vpop.permute.xlu0 %372 }
  0xd5   :  { %4114 = vst [vmem:[#allocation34_spill] sm:$0xff] %v2838_v58  ;;  %522 = vrot.lane.b32.xlu1 %v2411_v34, %s2195_s0 }
  0xd6   :  { %520 = vrot.lane.b32.xlu0 %v2431_v46, %s2195_s0  ;;  %v929_v46 = vsel %vm927_vm0, %v2184_v16, 0  ;;  %v510_v16 = vrot.slane %v508_v9, 1 }
  0xd7   :  { %v2844_v25 = vpop.permute.xlu1 %378  ;;  %2125 = vmatpush3.bf16.msra.mxu0 %v929_v46  ;;  %2149 = vmatpush3.bf16.msra.mxu1 %v929_v46 }
  0xd8   :  { %4115 = vst [vmem:[#allocation35_spill] sm:$0xff] %v2844_v25  ;;  %v2846_v0 = vpop.permute.xlu0 %376  ;;  %2126 = vmatprep.subr.bf16.mxu0 %v2185_v13  ;;  %2147 = vmatprep.subr.bf16.mxu1 %v2185_v13 }
  0xd9   :  { %4116 = vst [vmem:[#allocation36_spill] sm:$0xff] %v2846_v0  ;;  %526 = vrot.lane.b32.xlu1 %v504_v45, %s2195_s0  ;;  %v1038_v0 = vld [vmem:[%s4046_s4 + $0x30] sm:$0xff] }
  0xda   :  { %524 = vrot.lane.b32.xlu0 %v2624_v37, %s2195_s0 }
  0xdb   :  { %v2854_v2 = vpop.permute.xlu1 %382  ;;  %2127 = vmatpush3.bf16.msra.mxu0 %v2185_v13  ;;  %2150 = vmatpush3.bf16.msra.mxu1 %v2185_v13 }
  0xdc   :  { %4117 = vst [vmem:[#allocation37_spill] sm:$0xff] %v2854_v2  ;;  %v2856_v34 = vpop.permute.xlu0 %380 }
  0xdd   :  { %4118 = vst [vmem:[#allocation38_spill] sm:$0xff] %v2856_v34  ;;  %530 = vrot.lane.b32.xlu1 %v2468_v18, %s2195_s0  ;;  %v506_v18 = vshrl.u32 %v2806_v53, 16  ;;  %v2186_v34 = vld [vmem:[%s4045_s2] sm:$0xff]   ;;  %s2196_s2 = smov 32  }
  0xde   :  { %528 = vrot.lane.b32.xlu0 %v2478_v26, %s2195_s0  ;;  %2128 = vmatprep.subr.bf16.mxu0 %v2186_v34 }
  0xdf   :  { %v2866_v37 = vpop.permute.xlu1 %400  ;;  %2148 = vmatprep.subr.bf16.mxu1 %v2186_v34  ;;  %2129 = vmatpush3.bf16.msra.mxu0 %v2186_v34 }
  0xe0   :  { %v2868_v45 = vpop.permute.xlu0 %398  ;;  %2151 = vmatpush3.bf16.msra.mxu1 %v2186_v34 }
  0xe1   :  { %534 = vrot.lane.b32.xlu1 %v2484_v35, %s2195_s0  ;;  %v511_v35 = vor.u32 %v510_v16, %v506_v18 }
  0xe2   :  { %532 = vrot.lane.b32.xlu0 %v2489_v38, %s2195_s0 }
  0xe3   :  { %v2878_v26 = vpop.permute.xlu1 %404 }
  0xe4   :  { %v2880_v46 = vpop.permute.xlu0 %402 }
  0xe5   :  { %538 = vrot.lane.b32.xlu1 %v2494_v41, %s2195_s0 }
  0xe6   :  { %536 = vrot.lane.b32.xlu0 %v2498_v42, %s2195_s0  ;;  %v4059_v42 = vmov 0  }
  0xe7   :  { %v2886_v9 = vpop.permute.xlu1 %408  ;;  %2169 = vset.pattern.permute.xlu1 %v4059_v42  ;;  %v1034_v42 = vld [vmem:[%s4046_s4 + $0x10] sm:$0xff] }
  0xe8   :  { %v2888_v2 = vpop.permute.xlu0 %406 }
  0xe9   :  { %542 = vrot.lane.b32.xlu1 %v511_v35, %s2195_s0 }
  0xea   :  { %540 = vrot.lane.b32.xlu0 %v2652_v3, %s2195_s0 }
  0xeb   :  { %v2893_v38 = vpop.permute.xlu1 %412 }
  0xec   :  { %v2895_v13 = vpop.permute.xlu0 %410 }
  0xed   :  { %548 = vrot.lane.b32.xlu1 %v2510_v48, %s2196_s2  ;;  %v544_v48 = vrot.slane %v2764_v55, 1  ;;  %v4061_v55 = vmov 1  }
  0xee   :  { %546 = vrot.lane.b32.xlu0 %v2514_v49, %s2196_s2 }
  0xef   :  { %v2901_v41 = vpop.permute.xlu1 %416  ;;  %2170 = vset.pattern.permute.xlu0 %v4061_v55 }
  0xf0   :  { %4119 = vst [vmem:[#allocation39_spill] sm:$0xff] %v2901_v41  ;;  %v2904_v34 = vpop.permute.xlu0 %414 }
  0xf1   :  { %4120 = vst [vmem:[#allocation40_spill] sm:$0xff] %v2904_v34  ;;  %552 = vrot.lane.b32.xlu1 %v2519_v50, %s2196_s2  ;;  %v4125_v50 = vrot.slane %v2589_v15, 1  ;;  %v3079_v34 = vld [vmem:[%s4049_s5] ss:$0 sm:$0xff] }
  0xf2   :  { %550 = vrot.lane.b32.xlu0 %v2524_v51, %s2196_s2  ;;  %4151 = vst [vmem:[#allocation68_spill] sm:$0xff] %v3079_v34 }
  0xf3   :  { %v2910_v3 = vpop.permute.xlu1 %420 }
  0xf4   :  { %4121 = vst [vmem:[#allocation41_spill] sm:$0xff] %v2910_v3  ;;  %v2912_v18 = vpop.permute.xlu0 %418 }
  0xf5   :  { %4122 = vst [vmem:[#allocation42_spill] sm:$0xff] %v2912_v18  ;;  %556 = vrot.lane.b32.xlu1 %v2529_v52, %s2196_s2  ;;  %v1039_v18 = vld [vmem:[%s4046_s4 + $0x38] sm:$0xff] }
  0xf6   :  { %554 = vrot.lane.b32.xlu0 %v2534_v54, %s2196_s2 }
  0xf7   :  { %v2919_v49 = vpop.permute.xlu1 %424 }
  0xf8   :  { %4123 = vst [vmem:[#allocation43_spill] sm:$0xff] %v2919_v49  ;;  %v2921_v16 = vpop.permute.xlu0 %422 }
  0xf9   :  { %4124 = vst [vmem:[#allocation44_spill] sm:$0xff] %v2921_v16  ;;  %560 = vrot.lane.b32.xlu1 %v544_v48, %s2196_s2  ;;  %v1037_v16 = vld [vmem:[%s4046_s4 + $0x28] sm:$0xff] }
  0xfa   :  { %558 = vrot.lane.b32.xlu0 %v4125_v50, %s2196_s2 }
  0xfb   :  { %v2927_v51 = vpop.permute.xlu1 %428 }
  0xfc   :  { %4126 = vst [vmem:[#allocation45_spill] sm:$0xff] %v2927_v51  ;;  %v2929_v35 = vpop.permute.xlu0 %426 }
  0xfd   :  { %4127 = vst [vmem:[#allocation46_spill] sm:$0xff] %v2929_v35  ;;  %564 = vrot.lane.b32.xlu1 %v2546_v60, %s2196_s2  ;;  %v545_v60 = vrot.slane %v2806_v53, 1 }
  0xfe   :  { %562 = vrot.lane.b32.xlu0 %v2550_v61, %s2196_s2  ;;  %v1033_v61 = vld [vmem:[%s4046_s4 + $0x8] sm:$0xff] }
  0xff   :  { %v2935_v52 = vpop.permute.xlu1 %434 }
 0x100   :  { %v2937_v54 = vpop.permute.xlu0 %432 }
 0x101   :  { %568 = vrot.lane.b32.xlu1 %v2555_v62, %s2196_s2  ;;  %v2959_v62 = vstv %s4047_s6 }
 0x102   :  { %566 = vrot.lane.b32.xlu0 %v2560_v4, %s2196_s2  ;;  %4128 = vst [vmem:[#allocation47_spill] sm:$0xff] %v2959_v62  ;;  %v2970_v53 = vmul.f32 %v2959_v62, %v1033_v61  ;;  %v1036_v61 = vld [vmem:[%s4046_s4 + $0x20] sm:$0xff]  ;;  %v3030_v58 = vmul.f32 %v2959_v62, %v1039_v18  ;;  %v4148_v18 = vmov 1  }
 0x103   :  { %v2944_v15 = vpop.permute.xlu1 %438 }
 0x104   :  { %v2946_v48 = vpop.permute.xlu0 %436  ;;  %4142 = vst [vmem:[#allocation60_spill] sm:$0xff] %v3030_v58 }
 0x105   :  { %572 = vrot.lane.b32.xlu1 %v2565_v5, %s2196_s2  ;;  %v1032_v5 = vld [vmem:[%s4046_s4] sm:$0xff] }
 0x106   :  { %570 = vrot.lane.b32.xlu0 %v2570_v6, %s2196_s2  ;;  %v4129_v6 = vrot.slane %v2607_v30, 1  ;;  %v2979_v55 = vmul.f32 %v2959_v62, %v1032_v5  ;;  %v2990_v30 = vmul.f32 %v2959_v62, %v1034_v42  ;;  %v3008_v42 = vmul.f32 %v2959_v62, %v1036_v61 }
 0x107   :  { %v2961_v4 = vpop.permute.xlu1 %442  ;;  %v3026_v61 = vmul.f32 %v2959_v62, %v1038_v0 }
 0x108   :  { %v2966_v50 = vpop.permute.xlu0 %440  ;;  %4130 = vst [vmem:[#allocation48_spill] sm:$0xff] %v2979_v55  ;;  %4133 = vst [vmem:[#allocation51_spill] sm:$0xff] %v2990_v30 }
 0x109   :  { %576 = vrot.lane.b32.xlu1 %v545_v60, %s2196_s2  ;;  %v1035_v60 = vld [vmem:[%s4046_s4 + $0x18] sm:$0xff]  ;;  %4137 = vst [vmem:[#allocation55_spill] sm:$0xff] %v3008_v42  ;;  %4141 = vst [vmem:[#allocation59_spill] sm:$0xff] %v3026_v61 }
 0x10a   :  { %574 = vrot.lane.b32.xlu0 %v4129_v6, %s2196_s2  ;;  %v2997_v5 = vmul.f32 %v2959_v62, %v1035_v60  ;;  %v3015_v60 = vmul.f32 %v2959_v62, %v1037_v16 }
 0x10b   :  { %v2981_v35 = vpop.permute.xlu1 %446 }
 0x10c   :  { %4131 = vst [vmem:[#allocation49_spill] sm:$0xff] %v2981_v35  ;;  %v2986_v51 = vpop.permute.xlu0 %444  ;;  %4134 = vst [vmem:[#allocation52_spill] sm:$0xff] %v2997_v5 }
 0x10d   :  { %4132 = vst [vmem:[#allocation50_spill] sm:$0xff] %v2986_v51  ;;  %1078 = vperm.xlu1 %2169, %v2970_v53   ;;  %4138 = vst [vmem:[#allocation56_spill] sm:$0xff] %v3015_v60 }
 0x10e   :  { %1177 = vperm.xlu0 %2170, %v2979_v55  }
 0x10f   :  { %v2999_v6 = vpop.permute.xlu1 %450 }
 0x110   :  { %4135 = vst [vmem:[#allocation53_spill] sm:$0xff] %v2999_v6  ;;  %v3004_v49 = vpop.permute.xlu0 %448 }
 0x111   :  { %4136 = vst [vmem:[#allocation54_spill] sm:$0xff] %v3004_v49  ;;  %1083 = vperm.xlu1 %2169, %v2990_v30  }
 0x112   :  { %1189 = vperm.xlu0 %2170, %v2997_v5  }
 0x113   :  { %v3017_v25 = vpop.permute.xlu1 %454 }
 0x114   :  { %4139 = vst [vmem:[#allocation57_spill] sm:$0xff] %v3017_v25  ;;  %v3022_v3 = vpop.permute.xlu0 %452 }
 0x115   :  { %4140 = vst [vmem:[#allocation58_spill] sm:$0xff] %v3022_v3  ;;  %1093 = vperm.xlu1 %2169, %v3008_v42   ;;  %v3040_v3 = vld [vmem:[%s4048_s3] ss:$0 sm:$0xff] }
 0x116   :  { %1197 = vperm.xlu0 %2170, %v3015_v60   ;;  %4145 = vst [vmem:[#allocation63_spill] sm:$0xff] %v3040_v3 }
 0x117   :  { %v3032_v16 = vpop.permute.xlu1 %458 }
 0x118   :  { %4143 = vst [vmem:[#allocation61_spill] sm:$0xff] %v3032_v16  ;;  %v3034_v36 = vpop.permute.xlu0 %456 }
 0x119   :  { %4144 = vst [vmem:[#allocation62_spill] sm:$0xff] %v3034_v36  ;;  %1103 = vperm.xlu1 %2169, %v3026_v61   ;;  %v4065_v36 = vmov 2  }
 0x11a   :  { %1205 = vperm.xlu0 %2170, %v3030_v58  }
 0x11b   :  { %v3043_v0 = vpop.permute.xlu1 %462 }
 0x11c   :  { %4146 = vst [vmem:[#allocation64_spill] sm:$0xff] %v3043_v0  ;;  %v3045_v25 = vpop.permute.xlu0 %460 }
 0x11d   :  { %4147 = vst [vmem:[#allocation65_spill] sm:$0xff] %v3045_v25  ;;  %1165 = vrot.lane.b32.xlu1 %v3040_v3, %s2190_s23 }
 0x11e   :  { %2171 = vset.pattern.permute.xlu1 %v4148_v18  ;;  %1292 = vrot.lane.b32.xlu0 %v3040_v3, %s2192_s9 }
 0x11f   :  { %v3052_v62 = vpop.permute.xlu1 %468  ;;  %2173 = vset.pattern.permute.xlu0 %v4065_v36 }
 0x120   :  { %v3055_v16 = vpop.permute.xlu0 %466 }
 0x121   :  { %1181 = vperm.xlu1 %2171, %v2970_v53  }
 0x122   :  { %1308 = vperm.xlu0 %2173, %v2970_v53  }
 0x123   :  { %v3059_v25 = vpop.permute.xlu1 %472 }
 0x124   :  { %v3061_v0 = vpop.permute.xlu0 %470 }
 0x125   :  { %1185 = vperm.xlu1 %2171, %v2990_v30  }
 0x126   :  { %1320 = vperm.xlu0 %2173, %v3008_v42  }
 0x127   :  { %v3065_v18 = vpop.permute.xlu1 %476 }
 0x128   :  { %v3067_v49 = vpop.permute.xlu0 %474 }
 0x129   :  { %1193 = vperm.xlu1 %2171, %v3008_v42  }
 0x12a   :  { %1328 = vperm.xlu0 %2173, %v3026_v61  }
 0x12b   :  { %v3071_v36 = vpop.permute.xlu1 %480 }
 0x12c   :  { %4149 = vst [vmem:[#allocation66_spill] sm:$0xff] %v3071_v36  ;;  %v3073_v6 = vpop.permute.xlu0 %478 }
 0x12d   :  { %4150 = vst [vmem:[#allocation67_spill] sm:$0xff] %v3073_v6  ;;  %1201 = vperm.xlu1 %2171, %v3026_v61   ;;  %v4154_v6 = vmov 2  }
 0x12e   :  { %1343 = vrot.lane.b32.xlu0 %v3079_v34, %s2192_s9 }
 0x12f   :  { %v3083_v41 = vpop.permute.xlu1 %484  ;;  %2174 = vset.pattern.permute.xlu0 %v4069_v44 }
 0x130   :  { %4152 = vst [vmem:[#allocation69_spill] sm:$0xff] %v3083_v41  ;;  %v3086_v42 = vpop.permute.xlu0 %482 }
 0x131   :  { %4153 = vst [vmem:[#allocation70_spill] sm:$0xff] %v3086_v42  ;;  %1216 = vrot.lane.b32.xlu1 %v3079_v34, %s2190_s23 }
 0x132   :  { %2172 = vset.pattern.permute.xlu1 %v4154_v6  ;;  %1431 = vperm.xlu0 %2174, %v2979_v55  }
 0x133   :  { %v3092_v61 = vpop.permute.xlu1 %488 }
 0x134   :  { %4155 = vst [vmem:[#allocation71_spill] sm:$0xff] %v3092_v61  ;;  %v3094_v36 = vpop.permute.xlu0 %486 }
 0x135   :  { %4156 = vst [vmem:[#allocation72_spill] sm:$0xff] %v3094_v36  ;;  %1304 = vperm.xlu1 %2172, %v2979_v55  }
 0x137   :  { %v3097_v51 = vpop.permute.xlu1 %492 }
 0x138   :  { %4157 = vst [vmem:[#allocation73_spill] sm:$0xff] %v3097_v51  ;;  %v3099_v41 = vpop.permute.xlu0 %490 }
 0x139   :  { %4158 = vst [vmem:[#allocation74_spill] sm:$0xff] %v3099_v41  ;;  %1312 = vperm.xlu1 %2172, %v2990_v30   ;;  %v4161_v30 = vmov 3  }
 0x13b   :  { %v3102_v44 = vpop.permute.xlu1 %496 }
 0x13c   :  { %4159 = vst [vmem:[#allocation75_spill] sm:$0xff] %v3102_v44  ;;  %v3104_v42 = vpop.permute.xlu0 %494 }
 0x13d   :  { %4160 = vst [vmem:[#allocation76_spill] sm:$0xff] %v3104_v42  ;;  %1316 = vperm.xlu1 %2172, %v2997_v5  }
 0x13f   :  { %v515_v6 = vpop.permute.xlu1 %514 }
 0x140   :  { %v513_v34 = vpop.permute.xlu0 %512 }
 0x141   :  { %1324 = vperm.xlu1 %2172, %v3015_v60  }
 0x143   :  { %v3108_v61 = vpop.permute.xlu1 %518 }
 0x144   :  { %v3110_v36 = vpop.permute.xlu0 %516 }
 0x145   :  { %1332 = vperm.xlu1 %2172, %v3030_v58  }
 0x147   :  { %v3113_v55 = vpop.permute.xlu1 %522 }
 0x148   :  { %v3115_v41 = vpop.permute.xlu0 %520 }
 0x149   :  { %1419 = vrot.lane.b32.xlu1 %v3040_v3, %s2194_s11  ;;  %v580_v3 = vsel %vm578_vm1, %v2292_v21, %v2639_v40  ;;  %v594_v21 = vsel %vm578_vm1, %v2364_v1, %v2664_v19 }
 0x14a   :  { %2175 = vset.pattern.permute.xlu1 %v4161_v30 }
 0x14b   :  { %v3120_v5 = vpop.permute.xlu1 %526 }
 0x14c   :  { %v3122_v42 = vpop.permute.xlu0 %524 }
 0x14d   :  { %1435 = vperm.xlu1 %2175, %v2970_v53   ;;  %v584_v53 = vsel %vm578_vm1, %v2278_v14, %v2637_v39  ;;  %v588_v14 = vsel %vm578_vm1, %v2328_v47, %v2658_v11  ;;  %v3172_v47 = vsel %vm578_vm1, %v2388_v17, %v2673_v22 }
 0x14f   :  { %v3125_v60 = vpop.permute.xlu1 %530 }
 0x150   :  { %v3127_v44 = vpop.permute.xlu0 %528 }
 0x153   :  { %v3129_v58 = vpop.permute.xlu1 %534 }
 0x154   :  { %v3131_v51 = vpop.permute.xlu0 %532 }
 0x155   :  { %4162 = vst [vmem:[#allocation77_spill] sm:$0xff] %v3131_v51  ;;  %v586_v51 = vsel %vm578_vm1, %v2302_v28, %v2646_v7  ;;  %v592_v28 = vsel %vm578_vm1, %v2378_v12, %v2666_v20  ;;  %v4167_v20 = vld [vmem:[#allocation10_spill] sm:$0xff] }
 0x156   :  { %v3192_v22 = vsel %vm578_vm1, %v2402_v27, %v4167_v20  ;;  %v4174_v20 = vld [vmem:[#allocation20_spill] sm:$0xff] }
 0x157   :  { %v3133_v35 = vpop.permute.xlu1 %538 }
 0x158   :  { %4163 = vst [vmem:[#allocation78_spill] sm:$0xff] %v3133_v35  ;;  %v3135_v30 = vpop.permute.xlu0 %536  ;;  %v582_v35 = vsel %vm578_vm1, %v2304_v29, %v2648_v8  ;;  %v613_v29 = vsel %vm611_vm2, %v580_v3, %v2710_v63  ;;  %v4165_v8 = vld [vmem:[#allocation9_spill] sm:$0xff] }
 0x159   :  { %4164 = vst [vmem:[#allocation79_spill] sm:$0xff] %v3135_v30  ;;  %v590_v30 = vsel %vm578_vm1, %v2308_v32, %v2656_v10  ;;  %v615_v39 = vsel %vm611_vm2, %v582_v35, %v2708_v43  ;;  %v646_v1 = vsel %vm644_vm3, %v613_v29, %v2792_v57  ;;  %v4166_v10 = vld [vmem:[#allocation3_spill] sm:$0xff]  ;;  %v4168_v43 = vld [vmem:[#allocation16_spill] sm:$0xff]  ;;  %v4170_v29 = vld [vmem:[#allocation18_spill] sm:$0xff] }
 0x15a   :  { %v648_v32 = vsel %vm644_vm3, %v615_v39, %v2790_v33  ;;  %v3183_v11 = vsel %vm578_vm1, %v4166_v10, %v4165_v8  ;;  %v679_v19 = vsel %vm677_vm4, %v646_v1, %v2868_v45  ;;  %v619_v63 = vsel %vm611_vm2, %v586_v51, %v4168_v43  ;;  %v4171_v1 = vld [vmem:[#allocation19_spill] sm:$0xff] }
 0x15b   :  { %v3167_v40 = vpop.permute.xlu1 %542  ;;  %v681_v12 = vsel %vm677_vm4, %v648_v32, %v2866_v37  ;;  %v712_v57 = vsel %vm710_vm5, %v679_v19, %v2937_v54  ;;  %v4169_v37 = vld [vmem:[#allocation17_spill] sm:$0xff]  ;;  %v652_v3 = vsel %vm644_vm3, %v619_v63, %v2800_v23  ;;  %v4172_v19 = vld [vmem:[#allocation11_spill] sm:$0xff] }
 0x15c   :  { %v3178_v7 = vpop.permute.xlu0 %540  ;;  %v714_v17 = vsel %vm710_vm5, %v681_v12, %v2935_v52  ;;  %v617_v45 = vsel %vm611_vm2, %v584_v53, %v4169_v37  ;;  %v745_v35 = vsel %vm743_vm6, %v712_v57, %v3055_v16  ;;  %v685_v54 = vsel %vm677_vm4, %v652_v3, %v2878_v26  ;;  %v4176_v3 = vld [vmem:[#allocation30_spill] sm:$0xff] }
 0x15d   :  { %v747_v33 = vsel %vm743_vm6, %v714_v17, %v3052_v62  ;;  %v650_v51 = vsel %vm644_vm3, %v617_v45, %v2802_v24  ;;  %v778_v62 = vsel %vm776_vm7, %v745_v35, %v513_v34  ;;  %v718_v16 = vsel %vm710_vm5, %v685_v54, %v2944_v15 }
 0x15e   :  { %v780_v27 = vsel %vm776_vm7, %v747_v33, %v515_v6  ;;  %v683_v23 = vsel %vm677_vm4, %v650_v51, %v2880_v46  ;;  %v623_v24 = vsel %vm611_vm2, %v590_v30, %v4170_v29  ;;  %v751_v34 = vsel %vm743_vm6, %v718_v16, %v3059_v25  ;;  %v4175_v33 = vld [vmem:[#allocation21_spill] sm:$0xff]  ;;  %v4183_v29 = vld [vmem:[#allocation23_spill] sm:$0xff] }
 0x15f   :  { %v549_v52 = vpop.permute.xlu1 %548  ;;  %v716_v26 = vsel %vm710_vm5, %v683_v23, %v2946_v48  ;;  %v621_v12 = vsel %vm611_vm2, %v588_v14, %v4171_v1  ;;  %v656_v46 = vsel %vm644_vm3, %v623_v24, %v2810_v59  ;;  %v784_v8 = vsel %vm776_vm7, %v751_v34, %v3108_v61  ;;  %v4179_v51 = vld [vmem:[#allocation49_spill] sm:$0xff]  ;;  %v4182_v23 = vld [vmem:[#allocation66_spill] sm:$0xff]  ;;  %v4184_v24 = vld [vmem:[#allocation31_spill] sm:$0xff] }
 0x160   :  { %v813_v39 = vsel %vm809_vm8, %v780_v27, %v549_v52  ;;  %v547_v53 = vpop.permute.xlu0 %546  ;;  %v749_v15 = vsel %vm743_vm6, %v716_v26, %v3061_v0  ;;  %v654_v48 = vsel %vm644_vm3, %v621_v12, %v2812_v31  ;;  %v689_v25 = vsel %vm677_vm4, %v656_v46, %v2886_v9  ;;  %v4173_v0 = vld [vmem:[#allocation4_spill] sm:$0xff]  ;;  %v4185_v34 = vld [vmem:[#allocation67_spill] sm:$0xff] }
 0x161   :  { %v811_v6 = vsel %vm809_vm8, %v778_v62, %v547_v53  ;;  %v782_v10 = vsel %vm776_vm7, %v749_v15, %v3110_v36  ;;  %v600_v17 = vsel %vm578_vm1, %v4173_v0, %v4172_v19  ;;  %v687_v61 = vsel %vm677_vm4, %v654_v48, %v2888_v2  ;;  %v4177_v27 = vld [vmem:[#allocation12_spill] sm:$0xff]  ;;  %v4180_v62 = vld [vmem:[#allocation22_spill] sm:$0xff]  ;;  %v4187_v15 = vld [vmem:[#allocation39_spill] sm:$0xff] }
 0x162   :  { %v2035_v32 = vcombine.low %v811_v6, %v813_v39  ;;  %v722_v31 = vsel %vm710_vm5, %v689_v25, %v2961_v4  ;;  %v627_v36 = vsel %vm611_vm2, %v594_v21, %v4174_v20  ;;  %v720_v43 = vsel %vm710_vm5, %v687_v61, %v2966_v50  ;;  %v4181_v39 = vld [vmem:[#allocation50_spill] sm:$0xff]  ;;  %v4186_v12 = vld [vmem:[#allocation32_spill] sm:$0xff]  ;;  %v4188_v25 = vld [vmem:[#allocation13_spill] sm:$0xff] }
 0x163   :  { %v553_v30 = vpop.permute.xlu1 %552  ;;  %v755_v63 = vsel %vm743_vm6, %v722_v31, %v3065_v18  ;;  %v625_v37 = vsel %vm611_vm2, %v592_v28, %v4175_v33  ;;  %v660_v2 = vsel %vm644_vm3, %v627_v36, %v2818_v56  ;;  %v753_v4 = vsel %vm743_vm6, %v720_v43, %v3067_v49  ;;  %v4178_v49 = vld [vmem:[#allocation5_spill] sm:$0xff]  ;;  %v4192_v31 = vld [vmem:[#allocation24_spill] sm:$0xff] }
 0x164   :  { %v817_v14 = vsel %vm809_vm8, %v784_v8, %v553_v30  ;;  %2130 = vmatprep.mubr.msk.bf16.mxu0 %vm902_vm9, %v2035_v32  ;;  %v551_v59 = vpop.permute.xlu0 %550  ;;  %v788_v45 = vsel %vm776_vm7, %v755_v63, %v3113_v55  ;;  %v658_v50 = vsel %vm644_vm3, %v625_v37, %v4176_v3  ;;  %v693_v18 = vsel %vm677_vm4, %v660_v2, %v2893_v38  ;;  %v4191_v19 = vld [vmem:[#allocation53_spill] sm:$0xff]  ;;  %v4198_v3 = vld [vmem:[#allocation34_spill] sm:$0xff] }
 0x165   :  { %v815_v9 = vsel %vm809_vm8, %v782_v10, %v551_v59  ;;  %v786_v35 = vsel %vm776_vm7, %v753_v4, %v3115_v41  ;;  %v606_v52 = vsel %vm578_vm1, %v4178_v49, %v4177_v27  ;;  %v691_v55 = vsel %vm677_vm4, %v658_v50, %v2895_v13  ;;  %v4189_v10 = vld [vmem:[#allocation6_spill] sm:$0xff]  ;;  %v4194_v36 = vld [vmem:[#allocation69_spill] sm:$0xff]  ;;  %v4201_v49 = vld [vmem:[#allocation7_spill] sm:$0xff] }
 0x166   :  { %v2036_v57 = vcombine.low %v815_v9, %v817_v14  ;;  %v726_v54 = vsel %vm710_vm5, %v693_v18, %v4179_v51  ;;  %v631_v41 = vsel %vm611_vm2, %v3172_v47, %v4180_v62  ;;  %v724_v53 = vsel %vm710_vm5, %v691_v55, %v4181_v39  ;;  %v4193_v9 = vld [vmem:[#allocation54_spill] sm:$0xff]  ;;  %v4196_v37 = vld [vmem:[#allocation33_spill] sm:$0xff] }
 0x167   :  { %v557_v21 = vpop.permute.xlu1 %556  ;;  %v759_v16 = vsel %vm743_vm6, %v726_v54, %v4182_v23  ;;  %v629_v13 = vsel %vm611_vm2, %v3183_v11, %v4183_v29  ;;  %v664_v26 = vsel %vm644_vm3, %v631_v41, %v4184_v24  ;;  %v757_v32 = vsel %vm743_vm6, %v724_v53, %v4185_v34  ;;  %v4197_v4 = vld [vmem:[#allocation70_spill] sm:$0xff]  ;;  %v4199_v18 = vld [vmem:[#allocation41_spill] sm:$0xff]  ;;  %v4206_v23 = vld [vmem:[#allocation71_spill] sm:$0xff] }
 0x168   :  { %v821_v28 = vsel %vm809_vm8, %v788_v45, %v557_v21  ;;  %2131 = vmatmul.mubr.msk.bf16.vlgmr.msra.gmra.mxu0 %vm902_vm9, %v2036_v57  ;;  %v555_v56 = vpop.permute.xlu0 %554  ;;  %v792_v47 = vsel %vm776_vm7, %v759_v16, %v3120_v5  ;;  %v662_v46 = vsel %vm644_vm3, %v629_v13, %v4186_v12  ;;  %v697_v8 = vsel %vm677_vm4, %v664_v26, %v4187_v15  ;;  %v4190_v5 = vld [vmem:[#allocation40_spill] sm:$0xff]  ;;  %v4195_v57 = vld [vmem:[#allocation25_spill] sm:$0xff]  ;;  %v4200_v27 = vld [vmem:[#allocation14_spill] sm:$0xff] }
 0x169   :  { %v819_v38 = vsel %vm809_vm8, %v786_v35, %v555_v56  ;;  %v790_v30 = vsel %vm776_vm7, %v757_v32, %v3122_v42  ;;  %v604_v14 = vsel %vm578_vm1, %v4189_v10, %v4188_v25  ;;  %v695_v59 = vsel %vm677_vm4, %v662_v46, %v4190_v5  ;;  %v4203_v54 = vld [vmem:[#allocation57_spill] sm:$0xff]  ;;  %v4204_v41 = vld [vmem:[#allocation26_spill] sm:$0xff]  ;;  %v4207_v29 = vld [vmem:[#allocation27_spill] sm:$0xff] }
 0x16a   :  { %v2037_v6 = vcombine.low %v819_v38, %v821_v28  ;;  %v730_v0 = vsel %vm710_vm5, %v697_v8, %v4191_v19  ;;  %v635_v42 = vsel %vm611_vm2, %v3192_v22, %v4192_v31  ;;  %v728_v20 = vsel %vm710_vm5, %v695_v59, %v4193_v9  ;;  %v4205_v39 = vld [vmem:[#allocation58_spill] sm:$0xff]  ;;  %v4208_v24 = vld [vmem:[#allocation35_spill] sm:$0xff]  ;;  %v4209_v34 = vld [vmem:[#allocation72_spill] sm:$0xff] }
 0x16b   :  { %v561_v1 = vpop.permute.xlu1 %560  ;;  %v763_v43 = vsel %vm743_vm6, %v730_v0, %v4194_v36  ;;  %v633_v33 = vsel %vm611_vm2, %v600_v17, %v4195_v57  ;;  %v668_v2 = vsel %vm644_vm3, %v635_v42, %v4196_v37  ;;  %v761_v45 = vsel %vm743_vm6, %v728_v20, %v4197_v4  ;;  %v4211_v46 = vld [vmem:[#allocation43_spill] sm:$0xff]  ;;  %v4212_v8 = vld [vmem:[#allocation77_spill] sm:$0xff]  ;;  %v4214_v10 = vld [vmem:[#allocation8_spill] sm:$0xff] }
 0x16c   :  { %v825_v11 = vsel %vm809_vm8, %v792_v47, %v561_v1  ;;  %2134 = vmatprep.mubr.msk.bf16.mxu0 %vm902_vm9, %v2037_v6  ;;  %v559_v48 = vpop.permute.xlu0 %558  ;;  %v796_v21 = vsel %vm776_vm7, %v763_v43, %v3125_v60  ;;  %v666_v50 = vsel %vm644_vm3, %v633_v33, %v4198_v3  ;;  %v701_v35 = vsel %vm677_vm4, %v668_v2, %v4199_v18  ;;  %v4202_v60 = vld [vmem:[#allocation42_spill] sm:$0xff]  ;;  %v4210_v1 = vld [vmem:[#allocation36_spill] sm:$0xff]  ;;  %v4213_v25 = vld [vmem:[#allocation15_spill] sm:$0xff] }
 0x16d   :  { %v823_v61 = vsel %vm809_vm8, %v790_v30, %v559_v48  ;;  %v794_v28 = vsel %vm776_vm7, %v761_v45, %v3127_v44  ;;  %v610_v55 = vsel %vm578_vm1, %v4201_v49, %v4200_v27  ;;  %v699_v51 = vsel %vm677_vm4, %v666_v50, %v4202_v60  ;;  %v4216_v59 = vld [vmem:[#allocation61_spill] sm:$0xff]  ;;  %v4218_v42 = vld [vmem:[#allocation62_spill] sm:$0xff]  ;;  %v4228_v60 = vld [vmem:[#allocation64_spill] sm:$0xff] }
 0x16e   :  { %v2038_v63 = vcombine.low %v823_v61, %v825_v11  ;;  %v734_v38 = vsel %vm710_vm5, %v701_v35, %v4203_v54  ;;  %v639_v44 = vsel %vm611_vm2, %v606_v52, %v4204_v41  ;;  %v732_v53 = vsel %vm710_vm5, %v699_v51, %v4205_v39  ;;  %v4217_v61 = vld [vmem:[#allocation28_spill] sm:$0xff]  ;;  %v4219_v20 = vld [vmem:[#allocation73_spill] sm:$0xff]  ;;  %v4222_v2 = vld [vmem:[#allocation74_spill] sm:$0xff] }
 0x16f   :  { %v565_v22 = vpop.permute.xlu1 %564  ;;  %v767_v16 = vsel %vm743_vm6, %v734_v38, %v4206_v23  ;;  %v637_v13 = vsel %vm611_vm2, %v604_v14, %v4207_v29  ;;  %v672_v26 = vsel %vm644_vm3, %v639_v44, %v4208_v24  ;;  %v765_v32 = vsel %vm743_vm6, %v732_v53, %v4209_v34  ;;  %v4221_v33 = vld [vmem:[#allocation37_spill] sm:$0xff]  ;;  %v4223_v45 = vld [vmem:[#allocation78_spill] sm:$0xff]  ;;  %v4230_v41 = vld [vmem:[#allocation75_spill] sm:$0xff] }
 0x170   :  { %v829_v17 = vsel %vm809_vm8, %v796_v21, %v565_v22  ;;  %2135 = vmatmul.mubr.msk.bf16.gmra.mxu0 %vm902_vm9, %v2038_v63  ;;  %v563_v56 = vpop.permute.xlu0 %562  ;;  %v800_v47 = vsel %vm776_vm7, %v767_v16, %v3129_v58  ;;  %v670_v12 = vsel %vm644_vm3, %v637_v13, %v4210_v1  ;;  %v705_v15 = vsel %vm677_vm4, %v672_v26, %v4211_v46  ;;  %v4215_v58 = vld [vmem:[#allocation44_spill] sm:$0xff]  ;;  %v4220_v63 = vld [vmem:[#allocation29_spill] sm:$0xff]  ;;  %v4224_v3 = vld [vmem:[#allocation38_spill] sm:$0xff] }
 0x171   :  { %v827_v62 = vsel %vm809_vm8, %v794_v28, %v563_v56  ;;  %v798_v30 = vsel %vm776_vm7, %v765_v32, %v4212_v8  ;;  %v608_v14 = vsel %vm578_vm1, %v4214_v10, %v4213_v25  ;;  %v703_v5 = vsel %vm677_vm4, %v670_v12, %v4215_v58  ;;  %v4225_v18 = vld [vmem:[#allocation45_spill] sm:$0xff]  ;;  %v4226_v28 = vld [vmem:[#allocation79_spill] sm:$0xff]  ;;  %v4227_v49 = vld [vmem:[#allocation46_spill] sm:$0xff] }
 0x172   :  { %v2039_v6 = vcombine.low %v827_v62, %v829_v17  ;;  %v738_v19 = vsel %vm710_vm5, %v705_v15, %v4216_v59  ;;  %v643_v31 = vsel %vm611_vm2, %v610_v55, %v4217_v61  ;;  %v736_v9 = vsel %vm710_vm5, %v703_v5, %v4218_v42  ;;  %v4229_v38 = vld [vmem:[#allocation65_spill] sm:$0xff]  ;;  %v4231_v53 = vld [vmem:[#allocation76_spill] sm:$0xff] }
 0x173   :  { %v569_v52 = vpop.permute.xlu1 %568  ;;  %v771_v36 = vsel %vm743_vm6, %v738_v19, %v4219_v20  ;;  %v641_v57 = vsel %vm611_vm2, %v608_v14, %v4220_v63  ;;  %v676_v37 = vsel %vm644_vm3, %v643_v31, %v4221_v33  ;;  %v769_v4 = vsel %vm743_vm6, %v736_v9, %v4222_v2  ;;  %v4232_v19 = vld [vmem:[#allocation63_spill] sm:$0xff] }
 0x174   :  { %v833_v11 = vsel %vm809_vm8, %v800_v47, %v569_v52  ;;  %2138 = vmatprep.mubr.msk.bf16.mxu1 %vm902_vm9, %v2039_v6  ;;  %v567_v48 = vpop.permute.xlu0 %566  ;;  %v804_v21 = vsel %vm776_vm7, %v771_v36, %v4223_v45  ;;  %v674_v50 = vsel %vm644_vm3, %v641_v57, %v4224_v3  ;;  %v709_v35 = vsel %vm677_vm4, %v676_v37, %v4225_v18  ;;  %v4233_v57 = vld [vmem:[#allocation68_spill] sm:$0xff] }
 0x175   :  { %v831_v0 = vsel %vm809_vm8, %v798_v30, %v567_v48  ;;  %v802_v17 = vsel %vm776_vm7, %v769_v4, %v4226_v28  ;;  %v707_v55 = vsel %vm677_vm4, %v674_v50, %v4227_v49  ;;  %v742_v51 = vsel %vm710_vm5, %v709_v35, %v4228_v60 }
 0x176   :  { %v2040_v43 = vcombine.low %v831_v0, %v833_v11  ;;  %v740_v62 = vsel %vm710_vm5, %v707_v55, %v4229_v38  ;;  %v775_v44 = vsel %vm743_vm6, %v742_v51, %v4230_v41 }
 0x177   :  { %v573_v22 = vpop.permute.xlu1 %572  ;;  %v773_v23 = vsel %vm743_vm6, %v740_v62, %v4231_v53  ;;  %v808_v16 = vsel %vm776_vm7, %v775_v44, %v3167_v40 }
 0x178   :  { %v837_v56 = vsel %vm809_vm8, %v804_v21, %v573_v22  ;;  %2139 = vmatmul.mubr.msk.bf16.vlgmr.msra.gmra.mxu1 %vm902_vm9, %v2040_v43  ;;  %v571_v27 = vpop.permute.xlu0 %570  ;;  %v806_v29 = vsel %vm776_vm7, %v773_v23, %v3178_v7 }
 0x179   :  { %v835_v54 = vsel %vm809_vm8, %v802_v17, %v571_v27 }
 0x17a   :  { %v2041_v39 = vcombine.low %v835_v54, %v837_v56 }
 0x17b   :  { %v577_v6 = vpop.permute.xlu1 %576 }
 0x17c   :  { %v841_v13 = vsel %vm809_vm8, %v808_v16, %v577_v6  ;;  %2142 = vmatprep.mubr.msk.bf16.mxu1 %vm902_vm9, %v2041_v39  ;;  %v575_v24 = vpop.permute.xlu0 %574 }
 0x17d   :  { %v839_v26 = vsel %vm809_vm8, %v806_v29, %v575_v24 }
 0x17e   :  { %v2042_v34 = vcombine.low %v839_v26, %v841_v13 }
 0x180   :  { %2143 = vmatmul.mubr.msk.bf16.gmra.mxu1 %vm902_vm9, %v2042_v34 }
 0x188   :  { %v1079_v32 = vpop.permute.xlu1 %1078 }
 0x189   :  { %v1178_v40 = vpop.permute.xlu0 %1177 }
 0x18c   :  { %v1084_v47 = vpop.permute.xlu1 %1083 }
 0x18d   :  { %v3416_v7 = vpop.permute.xlu0 %1189 }
 0x190   :  { %v1094_v52 = vpop.permute.xlu1 %1093 }
 0x191   :  { %v3418_v8 = vpop.permute.xlu0 %1197 }
 0x194   :  { %v1104_v1 = vpop.permute.xlu1 %1103 }
 0x195   :  { %v3422_v11 = vpop.permute.xlu0 %1205 }
 0x198   :  { %v3412_v12 = vpop.permute.xlu1 %1165 }
 0x199   :  { %v3424_v48 = vpop.permute.xlu0 %1292 }
 0x19c   :  { %v3414_v46 = vpop.permute.xlu1 %1181 }
 0x19d   :  { %v3428_v10 = vpop.permute.xlu0 %1308 }
 0x1a0   :  { %v1186_v15 = vpop.permute.xlu1 %1185 }
 0x1a1   :  { %v3432_v58 = vpop.permute.xlu0 %1320 }
 0x1a4   :  { %v3420_v30 = vpop.permute.xlu1 %1193 }
 0x1a5   :  { %v3444_v9 = vpop.permute.xlu0 %1328 }
 0x1a8   :  { %v3426_v25 = vpop.permute.xlu1 %1201 }
 0x1a9   :  { %v3454_v22 = vpop.permute.xlu0 %1343 }
 0x1ac   :  { %v3430_v14 = vpop.permute.xlu1 %1216 }
 0x1b0   :  { %v1305_v5 = vpop.permute.xlu1 %1304 }
 0x1b4   :  { %v1313_v43 = vpop.permute.xlu1 %1312 }
 0x1b8   :  { %v1317_v29 = vpop.permute.xlu1 %1316 }
 0x228   :  { %v3434_v59 = vpop.f32.mrf.mxu0 }
 0x229   :  { %v1056_v0 = vmul.f32 %v3434_v59, %v4232_v19  ;;  %v1170_v61 = vmul.f32 %v3434_v59, %v3412_v12  ;;  %v1297_v31 = vmul.f32 %v3434_v59, %v3424_v48 }
 0x22a   :  { %v3442_v42 = vpop.f32.mrf.mxu0 }
 0x22b   :  { %v1113_v20 = vadd.f32 %v1084_v47, %v1056_v0  ;;  %v1210_v36 = vadd.f32 %v1186_v15, %v1170_v61  ;;  %v1337_v37 = vadd.f32 %v1313_v43, %v1297_v31  ;;  %v1168_v2 = vmul.f32 %v3412_v12, %v3442_v42 }
 0x22c   :  { %v3446_v63 = vpop.f32.mrf.mxu0  ;;  %v1295_v3 = vmul.f32 %v3424_v48, %v3442_v42 }
 0x22d   :  { %v1127_v33 = vadd.f32 %v4233_v57, %v1113_v20  ;;  %v1221_v21 = vadd.f32 %v3430_v14, %v1210_v36  ;;  %v1348_v17 = vadd.f32 %v3454_v22, %v1337_v37  ;;  %v1208_v56 = vadd.f32 %v1178_v40, %v1168_v2 }
 0x22e   :  { %v3451_v4 = vpop.f32.mrf.mxu0  ;;  %v1171_v55 = vmul.f32 %v3446_v63, %v3412_v12  ;;  %v1298_v60 = vmul.f32 %v3446_v63, %v3424_v48  ;;  %v1335_v54 = vadd.f32 %v1305_v5, %v1295_v3 }
 0x22f   :  { %vm1135_vm10 = vcmp.ge.f32.partialorder %v1127_v33, 0.0  ;;  %v1143_v45 = vmul.f32 0.2, %v1127_v33  ;;  %v1055_v50 = vmul.f32 %v4232_v19, %v3451_v4  ;;  %vm1229_vm11 = vcmp.ge.f32.partialorder %v1221_v21, 0.0 }
 0x230   :  { %v3460_v18 = vpop.f32.mrf.mxu0  ;;  %v1237_v62 = vmul.f32 0.2, %v1221_v21  ;;  %v1169_v44 = vmul.f32 %v3412_v12, %v3451_v4  ;;  %vm1356_vm12 = vcmp.ge.f32.partialorder %v1348_v17, 0.0  ;;  %v1364_v53 = vmul.f32 0.2, %v1348_v17 }
 0x231   :  { %v1151_v35 = vsel %vm1135_vm10, %v1127_v33, %v1143_v45  ;;  %v1060_v28 = vmul.f32 %v3460_v18, %v4232_v19  ;;  %v1112_v27 = vadd.f32 %v1079_v32, %v1055_v50  ;;  %v1296_v13 = vmul.f32 %v3424_v48, %v3451_v4  ;;  %v3518_v50 = vpop.permute.xlu1 %1324 }
 0x232   :  { %1159 = vst.msk [vmem:[%s4050_s7 + $0x10] sm:$0xff] %vm611_vm2, %v1151_v35  ;;  %v3469_v49 = vpop.f32.mrf.mxu0  ;;  %v1245_v16 = vsel %vm1229_vm11, %v1221_v21, %v1237_v62  ;;  %v1174_v26 = vmul.f32 %v3460_v18, %v3412_v12  ;;  %v1338_v34 = vadd.f32 %v1317_v29, %v1298_v60  ;;  %v1301_v15 = vmul.f32 %v3460_v18, %v3424_v48 }
 0x233   :  { %v1117_v51 = vadd.f32 %v1104_v1, %v1060_v28  ;;  %v1126_v38 = vadd.f32 %v4233_v57, %v1112_v27  ;;  %v1058_v41 = vmul.f32 %v4232_v19, %v3469_v49  ;;  %1263 = vrot.lane.b32.xlu0 %v1245_v16, %s2201_s26  ;;  %v1372_v1 = vsel %vm1356_vm12, %v1348_v17, %v1364_v53 }
 0x234   :  { %1390 = vrot.lane.b32.xlu1 %v1372_v1, %s2202_s29  ;;  %v1209_v0 = vadd.f32 %v3414_v46, %v1169_v44  ;;  %v1336_v61 = vadd.f32 %v3428_v10, %v1296_v13  ;;  %v1214_v31 = vadd.f32 %v3426_v25, %v1174_v26  ;;  %v1346_v20 = vadd.f32 %v3454_v22, %v1335_v54  ;;  %v3515_v2 = vpop.f32.mrf.mxu0 }
 0x235   :  { %v1131_v39 = vadd.f32 %v4233_v57, %v1117_v51  ;;  %vm1134_vm13 = vcmp.ge.f32.partialorder %v1126_v38, 0.0  ;;  %v1142_v23 = vmul.f32 0.2, %v1126_v38  ;;  %v1115_v6 = vadd.f32 %v1094_v52, %v1058_v41 }
 0x236   :  { %v1211_v52 = vadd.f32 %v3416_v7, %v1171_v55  ;;  %v1219_v7 = vadd.f32 %v3430_v14, %v1208_v56  ;;  %v1349_v33 = vadd.f32 %v3454_v22, %v1338_v34  ;;  %v1172_v37 = vmul.f32 %v3412_v12, %v3469_v49  ;;  %v3530_v51 = vpop.f32.mrf.mxu0 }
 0x237   :  { %vm1139_vm14 = vcmp.ge.f32.partialorder %v1131_v39, 0.0  ;;  %v1147_v24 = vmul.f32 0.2, %v1131_v39  ;;  %v1150_v32 = vsel %vm1134_vm13, %v1126_v38, %v1142_v23  ;;  %v1129_v47 = vadd.f32 %v4233_v57, %v1115_v6 }
 0x238   :  { %1158 = vst.msk [vmem:[%s4050_s7 + $0x8] sm:$0xff] %vm611_vm2, %v1150_v32  ;;  %vm1227_vm0 = vcmp.ge.f32.partialorder %v1219_v7, 0.0  ;;  %v1235_v43 = vmul.f32 0.2, %v1219_v7  ;;  %v1299_v46 = vmul.f32 %v3424_v48, %v3469_v49  ;;  %vm1354_vm1 = vcmp.ge.f32.partialorder %v1346_v20, 0.0 }
 0x239   :  { %v1155_v40 = vsel %vm1139_vm14, %v1131_v39, %v1147_v24  ;;  %vm1137_vm15 = vcmp.ge.f32.partialorder %v1129_v47, 0.0  ;;  %v1145_v5 = vmul.f32 0.2, %v1129_v47  ;;  %v1362_v25 = vmul.f32 0.2, %v1346_v20 }
 0x23a   :  { %1163 = vst.msk [vmem:[%s4050_s7 + $0x30] sm:$0xff] %vm611_vm2, %v1155_v40  ;;  %v1341_v10 = vadd.f32 %v3444_v9, %v1301_v15  ;;  %v1243_v45 = vsel %vm1227_vm0, %v1219_v7, %v1235_v43  ;;  %v1365_v21 = vmul.f32 0.2, %v1349_v33  ;;  %v1222_v3 = vadd.f32 %v3430_v14, %v1211_v52  ;;  %v4234_v43 = vld [vmem:[#allocation52_spill] sm:$0xff] }
 0x23b   :  { %v1153_v36 = vsel %vm1137_vm15, %v1129_v47, %v1145_v5  ;;  %1259 = vrot.lane.b32.xlu0 %v1243_v45, %s2201_s26  ;;  %v1370_v35 = vsel %vm1354_vm1, %v1346_v20, %v1362_v25  ;;  %vm1357_vm3 = vcmp.ge.f32.partialorder %v1349_v33, 0.0  ;;  %v1347_v28 = vadd.f32 %v3454_v22, %v1336_v61  ;;  %v4238_v45 = vld [vmem:[#allocation55_spill] sm:$0xff] }
 0x23c   :  { %1161 = vst.msk [vmem:[%s4050_s7 + $0x20] sm:$0xff] %vm611_vm2, %v1153_v36  ;;  %v1220_v17 = vadd.f32 %v3430_v14, %v1209_v0  ;;  %1386 = vrot.lane.b32.xlu1 %v1370_v35, %s2202_s29  ;;  %vm1230_vm4 = vcmp.ge.f32.partialorder %v1222_v3, 0.0  ;;  %v1238_v9 = vmul.f32 0.2, %v1222_v3  ;;  %v1212_v56 = vadd.f32 %v3420_v30, %v1172_v37  ;;  %v4241_v35 = vld [vmem:[#allocation48_spill] sm:$0xff] }
 0x23d   :  { %v1339_v27 = vadd.f32 %v3432_v58, %v1299_v46  ;;  %v1175_v55 = vmul.f32 %v3515_v2, %v3412_v12  ;;  %v1302_v60 = vmul.f32 %v3515_v2, %v3424_v48  ;;  %v1373_v54 = vsel %vm1357_vm3, %v1349_v33, %v1365_v21  ;;  %v1333_v58 = vpop.permute.xlu1 %1332  ;;  %v4235_v46 = vld [vmem:[#allocation56_spill] sm:$0xff] }
 0x23e   :  { %v1363_v38 = vmul.f32 0.2, %v1347_v28  ;;  %v1225_v62 = vadd.f32 %v3430_v14, %v1214_v31  ;;  %v1246_v41 = vsel %vm1230_vm4, %v1222_v3, %v1238_v9  ;;  %vm1355_vm5 = vcmp.ge.f32.partialorder %v1347_v28, 0.0  ;;  %v4239_v3 = vld [vmem:[#allocation59_spill] sm:$0xff] }
 0x23f   :  { %1392 = vrot.lane.b32.xlu0 %v1373_v54, %s2202_s29  ;;  %v1236_v44 = vmul.f32 0.2, %v1220_v17  ;;  %v1352_v30 = vadd.f32 %v3454_v22, %v1341_v10  ;;  %vm1228_vm6 = vcmp.ge.f32.partialorder %v1220_v17, 0.0  ;;  %v1215_v39 = vadd.f32 %v3422_v11, %v1175_v55  ;;  %v4237_v10 = vld [vmem:[#allocation60_spill] sm:$0xff] }
 0x240   :  { %1265 = vrot.lane.b32.xlu1 %v1246_v41, %s2201_s26  ;;  %v1173_v53 = vmul.f32 %v3412_v12, %v3530_v51  ;;  %v1342_v23 = vadd.f32 %v1333_v58, %v1302_v60  ;;  %v1371_v16 = vsel %vm1355_vm5, %v1347_v28, %v1363_v38  ;;  %v1241_v6 = vmul.f32 0.2, %v1225_v62 }
 0x241   :  { %v1223_v29 = vadd.f32 %v3430_v14, %v1212_v56  ;;  %v1244_v13 = vsel %vm1228_vm6, %v1220_v17, %v1236_v44  ;;  %vm1233_vm7 = vcmp.ge.f32.partialorder %v1225_v62, 0.0  ;;  %v1368_v24 = vmul.f32 0.2, %v1352_v30  ;;  %v1420_v28 = vpop.permute.xlu1 %1419  ;;  %v1432_v17 = vpop.permute.xlu0 %1431 }
 0x242   :  { %v1350_v26 = vadd.f32 %v3454_v22, %v1339_v27  ;;  %vm1360_vm8 = vcmp.ge.f32.partialorder %v1352_v30, 0.0  ;;  %v1213_v11 = vadd.f32 %v3418_v8, %v1173_v53  ;;  %v1249_v34 = vsel %vm1233_vm7, %v1225_v62, %v1241_v6 }
 0x243   :  { %1388 = vrot.lane.b32.xlu0 %v1371_v16, %s2202_s29  ;;  %v1239_v32 = vmul.f32 0.2, %v1223_v29  ;;  %v1353_v12 = vadd.f32 %v3454_v22, %v1342_v23  ;;  %v1376_v47 = vsel %vm1360_vm8, %v1352_v30, %v1368_v24  ;;  %vm1231_vm9 = vcmp.ge.f32.partialorder %v1223_v29, 0.0 }
 0x244   :  { %1261 = vrot.lane.b32.xlu1 %v1244_v13, %s2201_s26  ;;  %v1366_v1 = vmul.f32 0.2, %v1350_v26  ;;  %v1226_v52 = vadd.f32 %v3430_v14, %v1215_v39  ;;  %vm1358_vm10 = vcmp.ge.f32.partialorder %v1350_v26, 0.0  ;;  %v1224_v5 = vadd.f32 %v3430_v14, %v1213_v11 }
 0x245   :  { %v1247_v40 = vsel %vm1231_vm9, %v1223_v29, %v1239_v32  ;;  %v1369_v15 = vmul.f32 0.2, %v1353_v12  ;;  %vm1361_vm11 = vcmp.ge.f32.partialorder %v1353_v12, 0.0  ;;  %v1300_v0 = vmul.f32 %v3424_v48, %v3530_v51  ;;  %v4236_v48 = vld [vmem:[#allocation51_spill] sm:$0xff]  ;;  %v1436_v9 = vpop.permute.xlu1 %1435 }
 0x246   :  { %v1374_v8 = vsel %vm1358_vm10, %v1350_v26, %v1366_v1  ;;  %v1242_v7 = vmul.f32 0.2, %v1226_v52  ;;  %vm1234_vm12 = vcmp.ge.f32.partialorder %v1226_v52, 0.0  ;;  %v1240_v20 = vmul.f32 0.2, %v1224_v5 }
 0x247   :  { %1271 = vrot.lane.b32.xlu0 %v1249_v34, %s2201_s26  ;;  %v1377_v61 = vsel %vm1361_vm11, %v1353_v12, %v1369_v15  ;;  %vm1232_vm13 = vcmp.ge.f32.partialorder %v1224_v5, 0.0  ;;  %v1340_v36 = vadd.f32 %v3518_v50, %v1300_v0  ;;  %v4240_v50 = vmov 0  }
 0x248   :  { %1398 = vrot.lane.b32.xlu1 %v1376_v47, %s2202_s29  ;;  %v1250_v31 = vsel %vm1234_vm12, %v1226_v52, %v1242_v7  ;;  %v1248_v33 = vsel %vm1232_vm13, %v1224_v5, %v1240_v20  ;;  %v1422_v11 = vmul.f32 %v1420_v28, %v3442_v42  ;;  %v1423_v34 = vmul.f32 %v1420_v28, %v3451_v4 }
 0x249   :  { %v1351_v37 = vadd.f32 %v3454_v22, %v1340_v36  ;;  %v1424_v1 = vmul.f32 %v3434_v59, %v1420_v28  ;;  %v1054_v52 = vmul.f32 %v4232_v19, %v3442_v42  ;;  %v1425_v15 = vmul.f32 %v3446_v63, %v1420_v28 }
 0x24a   :  { %v1462_v47 = vadd.f32 %v1432_v17, %v1422_v11  ;;  %v1427_v5 = vmul.f32 %v1420_v28, %v3530_v51  ;;  %v1426_v4 = vmul.f32 %v1420_v28, %v3469_v49  ;;  %v1429_v7 = vmul.f32 %v3515_v2, %v1420_v28 }
 0x24b   :  { %1267 = vrot.lane.b32.xlu0 %v1247_v40, %s2201_s26  ;;  %v1367_v25 = vmul.f32 0.2, %v1351_v37  ;;  %vm1359_vm14 = vcmp.ge.f32.partialorder %v1351_v37, 0.0  ;;  %v1463_v40 = vadd.f32 %v1436_v9, %v1423_v34  ;;  %v1428_v0 = vmul.f32 %v3460_v18, %v1420_v28  ;;  %v3685_v34 = vld [vmem:[%s4049_s5] ss:$0 sm:$0xff] }
 0x24c   :  { %1394 = vrot.lane.b32.xlu1 %v1374_v8, %s2202_s29 }
 0x24d   :  { %v1375_v21 = vsel %vm1359_vm14, %v1351_v37, %v1367_v25 }
 0x24f   :  { %1400 = vrot.lane.b32.xlu0 %v1377_v61, %s2202_s29 }
 0x250   :  { %1273 = vrot.lane.b32.xlu1 %v1250_v31, %s2201_s26  ;;  %v1057_v31 = vmul.f32 %v3446_v63, %v4232_v19 }
 0x253   :  { %1443 = vperm.xlu0 %2174, %v4234_v43  }
 0x254   :  { %1269 = vrot.lane.b32.xlu1 %v1248_v33, %s2201_s26 }
 0x257   :  { %1451 = vperm.xlu0 %2174, %v4235_v46  }
 0x258   :  { %1439 = vperm.xlu1 %2175, %v4236_v48  }
 0x25b   :  { %1459 = vperm.xlu0 %2174, %v4237_v10  }
 0x25c   :  { %1447 = vperm.xlu1 %2175, %v4238_v45  }
 0x25f   :  { %1396 = vrot.lane.b32.xlu0 %v1375_v21, %s2202_s29 }
 0x260   :  { %1455 = vperm.xlu1 %2175, %v4239_v3   ;;  %2176 = vset.pattern.permute.xlu0 %v4240_v50 }
 0x263   :  { %1073 = vperm.xlu0 %2176, %v4241_v35  }
 0x264   :  { %1470 = vrot.lane.b32.xlu1 %v4233_v57, %s2194_s11 }
 0x265   :  { %2177 = vset.pattern.permute.xlu1 %v4240_v50 }
 0x267   :  { %1088 = vperm.xlu0 %2176, %v4234_v43   ;;  %v1059_v43 = vmul.f32 %v4232_v19, %v3530_v51 }
 0x26b   :  { %1098 = vperm.xlu0 %2176, %v4235_v46  }
 0x26f   :  { %1108 = vperm.xlu0 %2176, %v4237_v10  }
 0x2a5   :  { %v1264_v56 = vpop.permute.xlu0 %1263 }
 0x2a6   :  { %2058 = vst.msk [vmem:[%s4050_s7 + $0x50] sm:$0xff] %vm611_vm2, %v1264_v56  ;;  %v1391_v27 = vpop.permute.xlu1 %1390 }
 0x2a7   :  { %2066 = vst.msk [vmem:[%s4050_s7 + $0x90] sm:$0xff] %vm611_vm2, %v1391_v27 }
 0x2ad   :  { %v1260_v55 = vpop.permute.xlu0 %1259 }
 0x2ae   :  { %v1387_v60 = vpop.permute.xlu1 %1386  ;;  %2056 = vst.msk [vmem:[%s4050_s7 + $0x40] sm:$0xff] %vm611_vm2, %v1260_v55 }
 0x2af   :  { %2064 = vst.msk [vmem:[%s4050_s7 + $0x80] sm:$0xff] %vm611_vm2, %v1387_v60  ;;  %v2187_v60 = vld [vmem:[%s4048_s3] ss:$0 sm:$0xff] }
 0x2b1   :  { %v1393_v54 = vpop.permute.xlu0 %1392 }
 0x2b2   :  { %v1266_v38 = vpop.permute.xlu1 %1265  ;;  %2067 = vst.msk [vmem:[%s4050_s7 + $0x98] sm:$0xff] %vm611_vm2, %v1393_v54  ;;  %v1061_v54 = vmul.f32 %v2187_v60, %v3515_v2 }
 0x2b3   :  { %2059 = vst.msk [vmem:[%s4050_s7 + $0x58] sm:$0xff] %vm611_vm2, %v1266_v38 }
 0x2b5   :  { %v1389_v62 = vpop.permute.xlu0 %1388 }
 0x2b6   :  { %v1262_v41 = vpop.permute.xlu1 %1261  ;;  %2065 = vst.msk [vmem:[%s4050_s7 + $0x88] sm:$0xff] %vm611_vm2, %v1389_v62 }
 0x2b7   :  { %2057 = vst.msk [vmem:[%s4050_s7 + $0x48] sm:$0xff] %vm611_vm2, %v1262_v41 }
 0x2b9   :  { %v1272_v44 = vpop.permute.xlu0 %1271 }
 0x2ba   :  { %v1399_v30 = vpop.permute.xlu1 %1398  ;;  %2062 = vst.msk [vmem:[%s4050_s7 + $0x70] sm:$0xff] %vm611_vm2, %v1272_v44 }
 0x2bb   :  { %2070 = vst.msk [vmem:[%s4050_s7 + $0xb0] sm:$0xff] %vm611_vm2, %v1399_v30 }
 0x2bd   :  { %v1268_v58 = vpop.permute.xlu0 %1267 }
 0x2be   :  { %v1395_v39 = vpop.permute.xlu1 %1394  ;;  %2060 = vst.msk [vmem:[%s4050_s7 + $0x60] sm:$0xff] %vm611_vm2, %v1268_v58 }
 0x2bf   :  { %2068 = vst.msk [vmem:[%s4050_s7 + $0xa0] sm:$0xff] %vm611_vm2, %v1395_v39 }
 0x2c1   :  { %v1401_v53 = vpop.permute.xlu0 %1400 }
 0x2c2   :  { %v1274_v23 = vpop.permute.xlu1 %1273  ;;  %2071 = vst.msk [vmem:[%s4050_s7 + $0xb8] sm:$0xff] %vm611_vm2, %v1401_v53 }
 0x2c3   :  { %2063 = vst.msk [vmem:[%s4050_s7 + $0x78] sm:$0xff] %vm611_vm2, %v1274_v23 }
 0x2c6   :  { %v1270_v16 = vpop.permute.xlu1 %1269 }
 0x2c7   :  { %2061 = vst.msk [vmem:[%s4050_s7 + $0x68] sm:$0xff] %vm611_vm2, %v1270_v16 }
 0x2ce   :  { %v1444_v6 = vpop.permute.xlu0 %1443 }
 0x2cf   :  { %v1465_v59 = vadd.f32 %v1444_v6, %v1425_v15 }
 0x2d2   :  { %v1452_v29 = vpop.permute.xlu0 %1451 }
 0x2d3   :  { %v1440_v13 = vpop.permute.xlu1 %1439  ;;  %v1467_v33 = vadd.f32 %v1452_v29, %v1427_v5  ;;  %v4242_v5 = vld [vmem:[#allocation47_spill] sm:$0xff] }
 0x2d4   :  { %v1464_v8 = vadd.f32 %v1440_v13, %v1424_v1 }
 0x2d6   :  { %v1460_v24 = vpop.permute.xlu0 %1459 }
 0x2d7   :  { %v1448_v26 = vpop.permute.xlu1 %1447  ;;  %v1469_v27 = vadd.f32 %v1460_v24, %v1429_v7  ;;  %v1043_v7 = vld [vmem:[%s4046_s4 + $0x58] sm:$0xff] }
 0x2d8   :  { %v1466_v20 = vadd.f32 %v1448_v26, %v1426_v4 }
 0x2da   :  { %v1397_v32 = vpop.permute.xlu0 %1396 }
 0x2db   :  { %v1456_v12 = vpop.permute.xlu1 %1455  ;;  %2069 = vst.msk [vmem:[%s4050_s7 + $0xa8] sm:$0xff] %vm611_vm2, %v1397_v32 }
 0x2dc   :  { %v1468_v18 = vadd.f32 %v1456_v12, %v1428_v0  ;;  %v1040_v12 = vld [vmem:[%s4046_s4 + $0x40] sm:$0xff]  ;;  %v1042_v0 = vld [vmem:[%s4046_s4 + $0x50] sm:$0xff] }
 0x2dd   :  { %v1560_v4 = vmul.f32 %v4242_v5, %v1040_v12 }
 0x2de   :  { %v1074_v61 = vpop.permute.xlu0 %1073 }
 0x2df   :  { %v3649_v36 = vpop.permute.xlu1 %1470  ;;  %v1111_v42 = vadd.f32 %v1074_v61, %v1054_v52  ;;  %v1563_v61 = vmul.f32 %v4242_v5, %v1043_v7 }
 0x2e0   :  { %v1474_v49 = vadd.f32 %v3649_v36, %v1463_v40  ;;  %v1473_v37 = vadd.f32 %v3649_v36, %v1462_v47  ;;  %v1475_v46 = vadd.f32 %v3649_v36, %v1464_v8  ;;  %v1476_v63 = vadd.f32 %v3649_v36, %v1465_v59  ;;  %v1041_v47 = vld [vmem:[%s4046_s4 + $0x48] sm:$0xff] }
 0x2e1   :  { %v1125_v48 = vadd.f32 %v4233_v57, %v1111_v42  ;;  %v1477_v25 = vadd.f32 %v3649_v36, %v1466_v20  ;;  %v1478_v3 = vadd.f32 %v3649_v36, %v1467_v33  ;;  %v1479_v38 = vadd.f32 %v3649_v36, %v1468_v18  ;;  %v1045_v59 = vld [vmem:[%s4046_s4 + $0x68] sm:$0xff]  ;;  %v1044_v20 = vld [vmem:[%s4046_s4 + $0x60] sm:$0xff]  ;;  %v1047_v33 = vld [vmem:[%s4046_s4 + $0x78] sm:$0xff] }
 0x2e2   :  { %v1089_v10 = vpop.permute.xlu0 %1088  ;;  %vm1482_vm15 = vcmp.ge.f32.partialorder %v1474_v49, 0.0  ;;  %v1490_v45 = vmul.f32 0.2, %v1474_v49  ;;  %vm1481_vm0 = vcmp.ge.f32.partialorder %v1473_v37, 0.0  ;;  %v1489_v21 = vmul.f32 0.2, %v1473_v37 }
 0x2e3   :  { %vm1133_vm1 = vcmp.ge.f32.partialorder %v1125_v48, 0.0  ;;  %v1141_v19 = vmul.f32 0.2, %v1125_v48  ;;  %v1114_v51 = vadd.f32 %v1089_v10, %v1057_v31  ;;  %vm1483_vm3 = vcmp.ge.f32.partialorder %v1475_v46, 0.0  ;;  %v3735_v18 = vld [vmem:[%s4048_s3 + $0x1] ss:$0 sm:$0xff]  ;;  %v3749_v10 = vpop.f32.mrf.mxu1 }
 0x2e4   :  { %v1498_v50 = vsel %vm1482_vm15, %v1474_v49, %v1490_v45  ;;  %v1497_v35 = vsel %vm1481_vm0, %v1473_v37, %v1489_v21  ;;  %v1491_v28 = vmul.f32 0.2, %v1475_v46  ;;  %vm1484_vm4 = vcmp.ge.f32.partialorder %v1476_v63, 0.0  ;;  %v1046_v49 = vld [vmem:[%s4046_s4 + $0x70] sm:$0xff] }
 0x2e5   :  { %v1149_v17 = vsel %vm1133_vm1, %v1125_v48, %v1141_v19  ;;  %v1128_v9 = vadd.f32 %v4233_v57, %v1114_v51  ;;  %1515 = vrot.lane.b32.xlu1 %v1498_v50, %s2203_s22  ;;  %1513 = vrot.lane.b32.xlu0 %v1497_v35, %s2203_s22  ;;  %v1492_v56 = vmul.f32 0.2, %v1476_v63  ;;  %vm1485_vm6 = vcmp.ge.f32.partialorder %v1477_v25, 0.0  ;;  %v3759_v19 = vpop.f32.mrf.mxu1 }
 0x2e6   :  { %1157 = vst.msk [vmem:[%s4050_s7] sm:$0xff] %vm611_vm2, %v1149_v17  ;;  %v1099_v55 = vpop.permute.xlu0 %1098  ;;  %v1499_v44 = vsel %vm1483_vm3, %v1475_v46, %v1491_v28  ;;  %v1493_v58 = vmul.f32 0.2, %v1477_v25  ;;  %v1494_v39 = vmul.f32 0.2, %v1478_v3  ;;  %vm1486_vm7 = vcmp.ge.f32.partialorder %v1478_v3, 0.0 }
 0x2e7   :  { %vm1136_vm5 = vcmp.ge.f32.partialorder %v1128_v9, 0.0  ;;  %v1144_v62 = vmul.f32 0.2, %v1128_v9  ;;  %v1116_v41 = vadd.f32 %v1099_v55, %v1059_v43  ;;  %v1500_v30 = vsel %vm1484_vm4, %v1476_v63, %v1492_v56  ;;  %v3769_v50 = vpop.f32.mrf.mxu1 }
 0x2e8   :  { %v1480_v2 = vadd.f32 %v3649_v36, %v1469_v27  ;;  %v1501_v13 = vsel %vm1485_vm6, %v1477_v25, %v1493_v58  ;;  %v1502_v24 = vsel %vm1486_vm7, %v1478_v3, %v1494_v39  ;;  %vm1487_vm9 = vcmp.ge.f32.partialorder %v1479_v38, 0.0 }
 0x2e9   :  { %v1152_v53 = vsel %vm1136_vm5, %v1128_v9, %v1144_v62  ;;  %v1130_v23 = vadd.f32 %v4233_v57, %v1116_v41  ;;  %1517 = vrot.lane.b32.xlu0 %v1499_v44, %s2203_s22  ;;  %1519 = vrot.lane.b32.xlu1 %v1500_v30, %s2203_s22  ;;  %v1495_v57 = vmul.f32 0.2, %v1479_v38  ;;  %v1561_v8 = vmul.f32 %v4242_v5, %v1041_v47  ;;  %v3779_v17 = vpop.f32.mrf.mxu1 }
 0x2ea   :  { %1160 = vst.msk [vmem:[%s4050_s7 + $0x18] sm:$0xff] %vm611_vm2, %v1152_v53  ;;  %v1109_v16 = vpop.permute.xlu0 %1108  ;;  %v1496_v26 = vmul.f32 0.2, %v1480_v2  ;;  %vm1488_vm10 = vcmp.ge.f32.partialorder %v1480_v2, 0.0  ;;  %v1562_v31 = vmul.f32 %v4242_v5, %v1042_v0  ;;  %v1565_v42 = vmul.f32 %v4242_v5, %v1045_v59 }
 0x2eb   :  { %vm1138_vm8 = vcmp.ge.f32.partialorder %v1130_v23, 0.0  ;;  %v1146_v6 = vmul.f32 0.2, %v1130_v23  ;;  %v1118_v29 = vadd.f32 %v1109_v16, %v1061_v54  ;;  %v1503_v52 = vsel %vm1487_vm9, %v1479_v38, %v1495_v57  ;;  %v3789_v27 = vpop.f32.mrf.mxu1 }
 0x2ec   :  { %v1504_v40 = vsel %vm1488_vm10, %v1480_v2, %v1496_v26  ;;  %v1564_v43 = vmul.f32 %v4242_v5, %v1044_v20  ;;  %v1567_v37 = vmul.f32 %v4242_v5, %v1047_v33  ;;  %v1566_v46 = vmul.f32 %v4242_v5, %v1046_v49 }
 0x2ed   :  { %v1154_v11 = vsel %vm1138_vm8, %v1130_v23, %v1146_v6  ;;  %v1132_v32 = vadd.f32 %v3685_v34, %v1118_v29  ;;  %1521 = vrot.lane.b32.xlu0 %v1501_v13, %s2203_s22  ;;  %1523 = vrot.lane.b32.xlu1 %v1502_v24, %s2203_s22  ;;  %v4243_v48 = vmov 1   ;;  %v4244_v63 = vmov 2   ;;  %v3791_v55 = vpop.f32.mrf.mxu1 }
 0x2ee   :  { %1162 = vst.msk [vmem:[%s4050_s7 + $0x28] sm:$0xff] %vm611_vm2, %v1154_v11  ;;  %v4245_v25 = vmov 3   ;;  %v1553_v54 = vmul.f32 %v3735_v18, %v3779_v17  ;;  %v1552_v38 = vmul.f32 %v3735_v18, %v3759_v19  ;;  %v1554_v23 = vmul.f32 %v3749_v10, %v3735_v18 }
 0x2ef   :  { %vm1140_vm11 = vcmp.ge.f32.partialorder %v1132_v32, 0.0  ;;  %v1148_v1 = vmul.f32 0.2, %v1132_v32  ;;  %v3793_v60 = vpop.f32.mrf.mxu1  ;;  %v1555_v16 = vmul.f32 %v3769_v50, %v3735_v18  ;;  %v1558_v59 = vmul.f32 %v3789_v27, %v3735_v18 }
 0x2f1   :  { %v1156_v15 = vsel %vm1140_vm11, %v1132_v32, %v1148_v1  ;;  %1525 = vrot.lane.b32.xlu0 %v1503_v52, %s2203_s22  ;;  %1527 = vrot.lane.b32.xlu1 %v1504_v40, %s2203_s22  ;;  %v3799_v58 = vpop.f32.mrf.mxu1  ;;  %v1556_v32 = vmul.f32 %v3735_v18, %v3791_v55 }
 0x2f2   :  { %1164 = vst.msk [vmem:[%s4050_s7 + $0x38] sm:$0xff] %vm611_vm2, %v1156_v15  ;;  %v1557_v12 = vmul.f32 %v3735_v18, %v3799_v58 }
 0x2f5   :  { %1570 = vperm.xlu0 %2176, %v1560_v4   ;;  %1575 = vperm.xlu1 %2177, %v1561_v8  }
 0x2f9   :  { %1585 = vperm.xlu0 %2176, %v1563_v61   ;;  %1580 = vperm.xlu1 %2177, %v1562_v31  }
 0x2fd   :  { %1595 = vperm.xlu0 %2176, %v1565_v42   ;;  %1590 = vperm.xlu1 %2177, %v1564_v43  }
 0x301   :  { %1605 = vperm.xlu0 %2176, %v1567_v37   ;;  %1600 = vperm.xlu1 %2177, %v1566_v46  }
 0x305   :  { %2178 = vset.pattern.permute.xlu0 %v4243_v48  ;;  %1657 = vrot.lane.b32.xlu1 %v3735_v18, %s2190_s23 }
 0x306   :  { %1669 = vperm.xlu0 %2178, %v1560_v4   ;;  %2179 = vset.pattern.permute.xlu1 %v4243_v48 }
 0x309   :  { %1673 = vperm.xlu1 %2179, %v1561_v8  }
 0x30a   :  { %1681 = vperm.xlu0 %2178, %v1563_v61  }
 0x30d   :  { %1677 = vperm.xlu1 %2179, %v1562_v31  }
 0x30e   :  { %1689 = vperm.xlu0 %2178, %v1565_v42  }
 0x311   :  { %1685 = vperm.xlu1 %2179, %v1564_v43  }
 0x312   :  { %1697 = vperm.xlu0 %2178, %v1567_v37  }
 0x315   :  { %1693 = vperm.xlu1 %2179, %v1566_v46  }
 0x316   :  { %2181 = vset.pattern.permute.xlu0 %v4244_v63 }
 0x317   :  { %1797 = vperm.xlu0 %2181, %v1561_v8  }
 0x319   :  { %2180 = vset.pattern.permute.xlu1 %v4244_v63 }
 0x31a   :  { %1793 = vperm.xlu1 %2180, %v1560_v4  }
 0x31b   :  { %1809 = vperm.xlu0 %2181, %v1564_v43  }
 0x31e   :  { %1801 = vperm.xlu1 %2180, %v1562_v31  }
 0x31f   :  { %1817 = vperm.xlu0 %2181, %v1566_v46  }
 0x322   :  { %1805 = vperm.xlu1 %2180, %v1563_v61  }
 0x323   :  { %2182 = vset.pattern.permute.xlu0 %v4245_v25 }
 0x324   :  { %1917 = vperm.xlu0 %2182, %v1560_v4  }
 0x326   :  { %1813 = vperm.xlu1 %2180, %v1565_v42  }
 0x328   :  { %1929 = vperm.xlu0 %2182, %v1563_v61  }
 0x32a   :  { %1821 = vperm.xlu1 %2180, %v1567_v37  }
 0x32c   :  { %1937 = vperm.xlu0 %2182, %v1565_v42   ;;  %v1559_v42 = vmul.f32 %v3793_v60, %v3735_v18 }
 0x32e   :  { %2183 = vset.pattern.permute.xlu1 %v4245_v25 }
 0x32f   :  { %1921 = vperm.xlu1 %2183, %v1561_v8  }
 0x330   :  { %1945 = vperm.xlu0 %2182, %v1567_v37  }
 0x333   :  { %1925 = vperm.xlu1 %2183, %v1562_v31  }
 0x334   :  { %1905 = vrot.lane.b32.xlu0 %v3735_v18, %s2194_s11 }
 0x337   :  { %1933 = vperm.xlu1 %2183, %v1564_v43  }
 0x33b   :  { %1941 = vperm.xlu1 %2183, %v1566_v46  }
 0x33f   :  { %1781 = vrot.lane.b32.xlu1 %v3735_v18, %s2192_s9 }
 0x357   :  { %v1516_v45 = vpop.permute.xlu1 %1515  ;;  %v1514_v21 = vpop.permute.xlu0 %1513 }
 0x358   :  { %2073 = vst.msk [vmem:[%s4050_s7 + $0xc8] sm:$0xff] %vm611_vm2, %v1516_v45  ;;  %2072 = vst.msk [vmem:[%s4050_s7 + $0xc0] sm:$0xff] %vm611_vm2, %v1514_v21 }
 0x35b   :  { %v1520_v51 = vpop.permute.xlu1 %1519  ;;  %v1518_v3 = vpop.permute.xlu0 %1517 }
 0x35c   :  { %2075 = vst.msk [vmem:[%s4050_s7 + $0xd8] sm:$0xff] %vm611_vm2, %v1520_v51  ;;  %2074 = vst.msk [vmem:[%s4050_s7 + $0xd0] sm:$0xff] %vm611_vm2, %v1518_v3 }
 0x35f   :  { %v1524_v35 = vpop.permute.xlu1 %1523  ;;  %v1522_v28 = vpop.permute.xlu0 %1521 }
 0x360   :  { %2077 = vst.msk [vmem:[%s4050_s7 + $0xe8] sm:$0xff] %vm611_vm2, %v1524_v35  ;;  %2076 = vst.msk [vmem:[%s4050_s7 + $0xe0] sm:$0xff] %vm611_vm2, %v1522_v28 }
 0x363   :  { %v1528_v9 = vpop.permute.xlu1 %1527  ;;  %v1526_v56 = vpop.permute.xlu0 %1525 }
 0x364   :  { %2079 = vst.msk [vmem:[%s4050_s7 + $0xf8] sm:$0xff] %vm611_vm2, %v1528_v9  ;;  %2078 = vst.msk [vmem:[%s4050_s7 + $0xf0] sm:$0xff] %vm611_vm2, %v1526_v56 }
 0x370   :  { %v1576_v62 = vpop.permute.xlu1 %1575  ;;  %v1571_v41 = vpop.permute.xlu0 %1570 }
 0x371   :  { %v1609_v44 = vadd.f32 %v1576_v62, %v1553_v54  ;;  %v1608_v30 = vadd.f32 %v1571_v41, %v1552_v38 }
 0x373   :  { %v1617_v39 = vadd.f32 %v3685_v34, %v1609_v44  ;;  %v1616_v53 = vadd.f32 %v3685_v34, %v1608_v30 }
 0x374   :  { %v1581_v2 = vpop.permute.xlu1 %1580  ;;  %v1586_v6 = vpop.permute.xlu0 %1585 }
 0x375   :  { %vm1625_vm12 = vcmp.ge.f32.partialorder %v1617_v39, 0.0  ;;  %v1633_v29 = vmul.f32 0.2, %v1617_v39  ;;  %vm1624_vm13 = vcmp.ge.f32.partialorder %v1616_v53, 0.0  ;;  %v1632_v13 = vmul.f32 0.2, %v1616_v53 }
 0x376   :  { %v1610_v24 = vadd.f32 %v1581_v2, %v1554_v23  ;;  %v1611_v57 = vadd.f32 %v1586_v6, %v1555_v16 }
 0x377   :  { %v1641_v26 = vsel %vm1625_vm12, %v1617_v39, %v1633_v29  ;;  %v1640_v11 = vsel %vm1624_vm13, %v1616_v53, %v1632_v13 }
 0x378   :  { %2082 = vst.msk [vmem:[%s4050_s7 + $0x108] sm:$0xff] %vm611_vm2, %v1641_v26  ;;  %2081 = vst.msk [vmem:[%s4050_s7 + $0x100] sm:$0xff] %vm611_vm2, %v1640_v11  ;;  %v1618_v47 = vadd.f32 %v3685_v34, %v1610_v24  ;;  %v1619_v1 = vadd.f32 %v3685_v34, %v1611_v57  ;;  %v1591_v52 = vpop.permute.xlu1 %1590  ;;  %v1596_v40 = vpop.permute.xlu0 %1595 }
 0x379   :  { %v1612_v15 = vadd.f32 %v1591_v52, %v1556_v32  ;;  %v1613_v5 = vadd.f32 %v1596_v40, %v1557_v12 }
 0x37a   :  { %vm1626_vm14 = vcmp.ge.f32.partialorder %v1618_v47, 0.0  ;;  %v1634_v4 = vmul.f32 0.2, %v1618_v47  ;;  %vm1627_vm15 = vcmp.ge.f32.partialorder %v1619_v1, 0.0  ;;  %v1635_v8 = vmul.f32 0.2, %v1619_v1 }
 0x37b   :  { %v1620_v7 = vadd.f32 %v3685_v34, %v1612_v15  ;;  %v1621_v0 = vadd.f32 %v3685_v34, %v1613_v5 }
 0x37c   :  { %v1642_v61 = vsel %vm1626_vm14, %v1618_v47, %v1634_v4  ;;  %v1643_v31 = vsel %vm1627_vm15, %v1619_v1, %v1635_v8  ;;  %v1601_v20 = vpop.permute.xlu1 %1600  ;;  %v1606_v43 = vpop.permute.xlu0 %1605 }
 0x37d   :  { %2083 = vst.msk [vmem:[%s4050_s7 + $0x110] sm:$0xff] %vm611_vm2, %v1642_v61  ;;  %2084 = vst.msk [vmem:[%s4050_s7 + $0x118] sm:$0xff] %vm611_vm2, %v1643_v31  ;;  %vm1628_vm0 = vcmp.ge.f32.partialorder %v1620_v7, 0.0  ;;  %v1636_v33 = vmul.f32 0.2, %v1620_v7  ;;  %vm1629_vm1 = vcmp.ge.f32.partialorder %v1621_v0, 0.0  ;;  %v1614_v37 = vadd.f32 %v1601_v20, %v1558_v59 }
 0x37e   :  { %v1637_v49 = vmul.f32 0.2, %v1621_v0  ;;  %v1615_v46 = vadd.f32 %v1606_v43, %v1559_v42 }
 0x37f   :  { %v1644_v48 = vsel %vm1628_vm0, %v1620_v7, %v1636_v33  ;;  %v1622_v18 = vadd.f32 %v3685_v34, %v1614_v37 }
 0x380   :  { %v1645_v63 = vsel %vm1629_vm1, %v1621_v0, %v1637_v49  ;;  %2085 = vst.msk [vmem:[%s4050_s7 + $0x120] sm:$0xff] %vm611_vm2, %v1644_v48  ;;  %v1623_v25 = vadd.f32 %v3685_v34, %v1615_v46  ;;  %v1658_v45 = vpop.permute.xlu1 %1657 }
 0x381   :  { %2086 = vst.msk [vmem:[%s4050_s7 + $0x128] sm:$0xff] %vm611_vm2, %v1645_v63  ;;  %v1660_v21 = vmul.f32 %v1658_v45, %v3759_v19  ;;  %v1670_v51 = vpop.permute.xlu0 %1669  ;;  %vm1630_vm3 = vcmp.ge.f32.partialorder %v1622_v18, 0.0  ;;  %v1638_v3 = vmul.f32 0.2, %v1622_v18  ;;  %v1661_v9 = vmul.f32 %v1658_v45, %v3779_v17 }
 0x382   :  { %vm1631_vm4 = vcmp.ge.f32.partialorder %v1623_v25, 0.0  ;;  %v1639_v35 = vmul.f32 0.2, %v1623_v25  ;;  %v1663_v62 = vmul.f32 %v3769_v50, %v1658_v45  ;;  %v1662_v23 = vmul.f32 %v3749_v10, %v1658_v45 }
 0x383   :  { %v1700_v28 = vadd.f32 %v1670_v51, %v1660_v21  ;;  %v1646_v56 = vsel %vm1630_vm3, %v1622_v18, %v1638_v3  ;;  %v1665_v6 = vmul.f32 %v1658_v45, %v3799_v58  ;;  %v1664_v47 = vmul.f32 %v1658_v45, %v3791_v55 }
 0x384   :  { %v1647_v54 = vsel %vm1631_vm4, %v1623_v25, %v1639_v35  ;;  %v1674_v38 = vpop.permute.xlu1 %1673  ;;  %2087 = vst.msk [vmem:[%s4050_s7 + $0x130] sm:$0xff] %vm611_vm2, %v1646_v56  ;;  %v1667_v40 = vmul.f32 %v3793_v60, %v1658_v45  ;;  %v1666_v7 = vmul.f32 %v3789_v27, %v1658_v45 }
 0x385   :  { %2088 = vst.msk [vmem:[%s4050_s7 + $0x138] sm:$0xff] %vm611_vm2, %v1647_v54  ;;  %v1708_v34 = vadd.f32 %v1700_v28, %v3430_v14  ;;  %v1701_v41 = vadd.f32 %v1674_v38, %v1661_v9  ;;  %v1682_v44 = vpop.permute.xlu0 %1681 }
 0x386   :  { %v1703_v30 = vadd.f32 %v1682_v44, %v1663_v62 }
 0x387   :  { %v1724_v39 = vmul.f32 0.2, %v1708_v34  ;;  %v1709_v53 = vadd.f32 %v1701_v41, %v3430_v14  ;;  %vm1716_vm5 = vcmp.ge.f32.partialorder %v1708_v34, 0.0 }
 0x388   :  { %v1711_v2 = vadd.f32 %v1703_v30, %v3430_v14  ;;  %v1678_v16 = vpop.permute.xlu1 %1677 }
 0x389   :  { %v1725_v29 = vmul.f32 0.2, %v1709_v53  ;;  %v1702_v13 = vadd.f32 %v1678_v16, %v1662_v23  ;;  %v1690_v24 = vpop.permute.xlu0 %1689  ;;  %v1732_v57 = vsel %vm1716_vm5, %v1708_v34, %v1724_v39  ;;  %vm1717_vm6 = vcmp.ge.f32.partialorder %v1709_v53, 0.0 }
 0x38a   :  { %v1705_v26 = vadd.f32 %v1690_v24, %v1665_v6  ;;  %1748 = vrot.lane.b32.xlu1 %v1732_v57, %s2201_s26  ;;  %v1727_v11 = vmul.f32 0.2, %v1711_v2  ;;  %vm1719_vm7 = vcmp.ge.f32.partialorder %v1711_v2, 0.0 }
 0x38b   :  { %v1710_v32 = vadd.f32 %v1702_v13, %v3430_v14  ;;  %v1733_v12 = vsel %vm1717_vm6, %v1709_v53, %v1725_v29 }
 0x38c   :  { %v1713_v1 = vadd.f32 %v1705_v26, %v3430_v14  ;;  %1750 = vrot.lane.b32.xlu0 %v1733_v12, %s2201_s26  ;;  %v1686_v52 = vpop.permute.xlu1 %1685  ;;  %v1735_v59 = vsel %vm1719_vm7, %v1711_v2, %v1727_v11 }
 0x38d   :  { %v1726_v15 = vmul.f32 0.2, %v1710_v32  ;;  %v1704_v5 = vadd.f32 %v1686_v52, %v1664_v47  ;;  %v1698_v4 = vpop.permute.xlu0 %1697  ;;  %vm1718_vm8 = vcmp.ge.f32.partialorder %v1710_v32, 0.0 }
 0x38e   :  { %v1707_v8 = vadd.f32 %v1698_v4, %v1667_v40  ;;  %v1729_v0 = vmul.f32 0.2, %v1713_v1  ;;  %vm1721_vm9 = vcmp.ge.f32.partialorder %v1713_v1, 0.0 }
 0x38f   :  { %v1712_v61 = vadd.f32 %v1704_v5, %v3430_v14  ;;  %v1734_v31 = vsel %vm1718_vm8, %v1710_v32, %v1726_v15 }
 0x390   :  { %v1715_v20 = vadd.f32 %v1707_v8, %v3430_v14  ;;  %v1694_v42 = vpop.permute.xlu1 %1693  ;;  %1752 = vrot.lane.b32.xlu1 %v1734_v31, %s2201_s26  ;;  %1754 = vrot.lane.b32.xlu0 %v1735_v59, %s2201_s26  ;;  %v1737_v63 = vsel %vm1721_vm9, %v1713_v1, %v1729_v0 }
 0x391   :  { %v1728_v43 = vmul.f32 0.2, %v1712_v61  ;;  %v1706_v33 = vadd.f32 %v1694_v42, %v1666_v7  ;;  %vm1720_vm10 = vcmp.ge.f32.partialorder %v1712_v61, 0.0 }
 0x392   :  { %v1731_v49 = vmul.f32 0.2, %v1715_v20  ;;  %v1798_v46 = vpop.permute.xlu0 %1797  ;;  %vm1723_vm11 = vcmp.ge.f32.partialorder %v1715_v20, 0.0 }
 0x393   :  { %v1714_v37 = vadd.f32 %v1706_v33, %v3430_v14  ;;  %v1736_v48 = vsel %vm1720_vm10, %v1712_v61, %v1728_v43 }
 0x394   :  { %1756 = vrot.lane.b32.xlu1 %v1736_v48, %s2201_s26  ;;  %1758 = vrot.lane.b32.xlu0 %v1737_v63, %s2201_s26  ;;  %v1739_v21 = vsel %vm1723_vm11, %v1715_v20, %v1731_v49 }
 0x395   :  { %v1730_v18 = vmul.f32 0.2, %v1714_v37  ;;  %v1794_v25 = vpop.permute.xlu1 %1793  ;;  %vm1722_vm12 = vcmp.ge.f32.partialorder %v1714_v37, 0.0 }
 0x396   :  { %v1810_v51 = vpop.permute.xlu0 %1809 }
 0x397   :  { %v1738_v45 = vsel %vm1722_vm12, %v1714_v37, %v1730_v18 }
 0x398   :  { %1760 = vrot.lane.b32.xlu1 %v1738_v45, %s2201_s26  ;;  %1762 = vrot.lane.b32.xlu0 %v1739_v21, %s2201_s26 }
 0x399   :  { %v1802_v3 = vpop.permute.xlu1 %1801 }
 0x39a   :  { %v1818_v35 = vpop.permute.xlu0 %1817 }
 0x39d   :  { %v1806_v14 = vpop.permute.xlu1 %1805 }
 0x39f   :  { %v1918_v9 = vpop.permute.xlu0 %1917 }
 0x3a1   :  { %v1814_v28 = vpop.permute.xlu1 %1813 }
 0x3a3   :  { %v1930_v38 = vpop.permute.xlu0 %1929 }
 0x3a5   :  { %v1822_v56 = vpop.permute.xlu1 %1821 }
 0x3a7   :  { %v3877_v34 = vpop.permute.xlu0 %1937 }
 0x3aa   :  { %v1922_v54 = vpop.permute.xlu1 %1921 }
 0x3ab   :  { %v3883_v30 = vpop.permute.xlu0 %1945 }
 0x3ae   :  { %v1926_v62 = vpop.permute.xlu1 %1925 }
 0x3af   :  { %v3891_v13 = vpop.permute.xlu0 %1905 }
 0x3b0   :  { %v1909_v4 = vmul.f32 %v3891_v13, %v3779_v17  ;;  %v1908_v8 = vmul.f32 %v3891_v13, %v3759_v19 }
 0x3b2   :  { %v3879_v41 = vpop.permute.xlu1 %1933  ;;  %v1949_v48 = vadd.f32 %v1922_v54, %v1909_v4  ;;  %v1948_v63 = vadd.f32 %v1918_v9, %v1908_v8 }
 0x3b6   :  { %v3881_v44 = vpop.permute.xlu1 %1941 }
 0x3ba   :  { %v1782_v39 = vpop.permute.xlu1 %1781 }
 0x3bb   :  { %v1784_v53 = vmul.f32 %v1782_v39, %v3759_v19  ;;  %v1785_v23 = vmul.f32 %v1782_v39, %v3779_v17  ;;  %v1786_v2 = vmul.f32 %v3749_v10, %v1782_v39  ;;  %v1787_v16 = vmul.f32 %v3769_v50, %v1782_v39 }
 0x3bc   :  { %v1789_v6 = vmul.f32 %v1782_v39, %v3799_v58  ;;  %v1788_v29 = vmul.f32 %v1782_v39, %v3791_v55  ;;  %v1791_v11 = vmul.f32 %v3793_v60, %v1782_v39  ;;  %v1790_v1 = vmul.f32 %v3789_v27, %v1782_v39 }
 0x3bd   :  { %v1824_v24 = vadd.f32 %v1794_v25, %v1784_v53  ;;  %v1825_v57 = vadd.f32 %v1798_v46, %v1785_v23  ;;  %v1826_v26 = vadd.f32 %v1802_v3, %v1786_v2  ;;  %v1827_v32 = vadd.f32 %v1806_v14, %v1787_v16 }
 0x3be   :  { %v1829_v12 = vadd.f32 %v1814_v28, %v1789_v6  ;;  %v1828_v47 = vadd.f32 %v1810_v51, %v1788_v29  ;;  %v1831_v59 = vadd.f32 %v1822_v56, %v1791_v11  ;;  %v1830_v20 = vadd.f32 %v1818_v35, %v1790_v1 }
 0x3bf   :  { %v1832_v52 = vadd.f32 %v1824_v24, %v3454_v22  ;;  %v1833_v40 = vadd.f32 %v1825_v57, %v3454_v22  ;;  %v1834_v15 = vadd.f32 %v1826_v26, %v3454_v22  ;;  %v1835_v5 = vadd.f32 %v1827_v32, %v3454_v22 }
 0x3c0   :  { %v1837_v61 = vadd.f32 %v1829_v12, %v3454_v22  ;;  %v1836_v31 = vadd.f32 %v1828_v47, %v3454_v22  ;;  %v1911_v19 = vmul.f32 %v3769_v50, %v3891_v13  ;;  %v1910_v17 = vmul.f32 %v3749_v10, %v3891_v13 }
 0x3c1   :  { %vm1840_vm13 = vcmp.ge.f32.partialorder %v1832_v52, 0.0  ;;  %v1848_v7 = vmul.f32 0.2, %v1832_v52  ;;  %vm1841_vm14 = vcmp.ge.f32.partialorder %v1833_v40, 0.0  ;;  %v1849_v0 = vmul.f32 0.2, %v1833_v40 }
 0x3c2   :  { %v1850_v33 = vmul.f32 0.2, %v1834_v15  ;;  %v1851_v49 = vmul.f32 0.2, %v1835_v5  ;;  %vm1842_vm15 = vcmp.ge.f32.partialorder %v1834_v15, 0.0  ;;  %vm1843_vm0 = vcmp.ge.f32.partialorder %v1835_v5, 0.0 }
 0x3c3   :  { %v1856_v42 = vsel %vm1840_vm13, %v1832_v52, %v1848_v7  ;;  %v1857_v43 = vsel %vm1841_vm14, %v1833_v40, %v1849_v0  ;;  %v1853_v37 = vmul.f32 0.2, %v1837_v61  ;;  %v1839_v46 = vadd.f32 %v1831_v59, %v3454_v22 }
 0x3c4   :  { %1872 = vrot.lane.b32.xlu1 %v1856_v42, %s2202_s29  ;;  %1874 = vrot.lane.b32.xlu0 %v1857_v43, %s2202_s29  ;;  %v1858_v18 = vsel %vm1842_vm15, %v1834_v15, %v1850_v33  ;;  %v1859_v25 = vsel %vm1843_vm0, %v1835_v5, %v1851_v49  ;;  %v1852_v45 = vmul.f32 0.2, %v1836_v31  ;;  %v1838_v21 = vadd.f32 %v1830_v20, %v3454_v22 }
 0x3c5   :  { %vm1845_vm1 = vcmp.ge.f32.partialorder %v1837_v61, 0.0  ;;  %vm1844_vm3 = vcmp.ge.f32.partialorder %v1836_v31, 0.0  ;;  %v1912_v50 = vmul.f32 %v3891_v13, %v3791_v55  ;;  %v1913_v10 = vmul.f32 %v3891_v13, %v3799_v58 }
 0x3c6   :  { %v1957_v51 = vadd.f32 %v1949_v48, %v3649_v36  ;;  %v1956_v3 = vadd.f32 %v1948_v63, %v3649_v36  ;;  %v1951_v14 = vadd.f32 %v1930_v38, %v1911_v19  ;;  %v1950_v35 = vadd.f32 %v1926_v62, %v1910_v17 }
 0x3c7   :  { %v1861_v28 = vsel %vm1845_vm1, %v1837_v61, %v1853_v37  ;;  %v1860_v22 = vsel %vm1844_vm3, %v1836_v31, %v1852_v45  ;;  %v1855_v9 = vmul.f32 0.2, %v1839_v46  ;;  %v1854_v56 = vmul.f32 0.2, %v1838_v21 }
 0x3c8   :  { %1876 = vrot.lane.b32.xlu1 %v1858_v18, %s2202_s29  ;;  %1878 = vrot.lane.b32.xlu0 %v1859_v25, %s2202_s29  ;;  %vm1847_vm4 = vcmp.ge.f32.partialorder %v1839_v46, 0.0  ;;  %vm1846_vm5 = vcmp.ge.f32.partialorder %v1838_v21, 0.0  ;;  %v1915_v55 = vmul.f32 %v3793_v60, %v3891_v13  ;;  %v1952_v58 = vadd.f32 %v3879_v41, %v1912_v50 }
 0x3c9   :  { %v1959_v54 = vadd.f32 %v1951_v14, %v3649_v36  ;;  %v1958_v38 = vadd.f32 %v1950_v35, %v3649_v36  ;;  %v1953_v62 = vadd.f32 %v3877_v34, %v1913_v10  ;;  %v1863_v39 = vsel %vm1847_vm4, %v1839_v46, %v1855_v9 }
 0x3ca   :  { %v1862_v53 = vsel %vm1846_vm5, %v1838_v21, %v1854_v56  ;;  %v1973_v23 = vmul.f32 0.2, %v1957_v51  ;;  %v1972_v2 = vmul.f32 0.2, %v1956_v3  ;;  %v1914_v16 = vmul.f32 %v3789_v27, %v3891_v13 }
 0x3cb   :  { %vm1965_vm6 = vcmp.ge.f32.partialorder %v1957_v51, 0.0  ;;  %vm1964_vm7 = vcmp.ge.f32.partialorder %v1956_v3, 0.0  ;;  %v1960_v60 = vadd.f32 %v1952_v58, %v3649_v36  ;;  %v1961_v6 = vadd.f32 %v1953_v62, %v3649_v36 }
 0x3cc   :  { %1882 = vrot.lane.b32.xlu0 %v1861_v28, %s2202_s29  ;;  %1880 = vrot.lane.b32.xlu1 %v1860_v22, %s2202_s29  ;;  %v1954_v41 = vadd.f32 %v3881_v44, %v1914_v16  ;;  %v1955_v34 = vadd.f32 %v3883_v30, %v1915_v55  ;;  %v1981_v29 = vsel %vm1965_vm6, %v1957_v51, %v1973_v23  ;;  %v1975_v57 = vmul.f32 0.2, %v1959_v54 }
 0x3cd   :  { %v1980_v24 = vsel %vm1964_vm7, %v1956_v3, %v1972_v2  ;;  %v1974_v26 = vmul.f32 0.2, %v1958_v38  ;;  %vm1967_vm8 = vcmp.ge.f32.partialorder %v1959_v54, 0.0  ;;  %vm1966_vm9 = vcmp.ge.f32.partialorder %v1958_v38, 0.0 }
 0x3ce   :  { %v1976_v27 = vmul.f32 0.2, %v1960_v60  ;;  %v1962_v13 = vadd.f32 %v1954_v41, %v3649_v36  ;;  %v1983_v11 = vsel %vm1967_vm8, %v1959_v54, %v1975_v57  ;;  %v1977_v44 = vmul.f32 0.2, %v1961_v6 }
 0x3cf   :  { %v1982_v32 = vsel %vm1966_vm9, %v1958_v38, %v1974_v26  ;;  %v1963_v12 = vadd.f32 %v1955_v34, %v3649_v36  ;;  %vm1969_vm10 = vcmp.ge.f32.partialorder %v1961_v6, 0.0  ;;  %vm1968_vm11 = vcmp.ge.f32.partialorder %v1960_v60, 0.0 }
 0x3d0   :  { %1886 = vrot.lane.b32.xlu0 %v1863_v39, %s2202_s29  ;;  %1884 = vrot.lane.b32.xlu1 %v1862_v53, %s2202_s29  ;;  %v1978_v30 = vmul.f32 0.2, %v1962_v13  ;;  %v1985_v47 = vsel %vm1969_vm10, %v1961_v6, %v1977_v44  ;;  %v1984_v1 = vsel %vm1968_vm11, %v1960_v60, %v1976_v27  ;;  %vm1970_vm13 = vcmp.ge.f32.partialorder %v1962_v13, 0.0 }
 0x3d1   :  { %v1979_v52 = vmul.f32 0.2, %v1963_v12  ;;  %vm1971_vm12 = vcmp.ge.f32.partialorder %v1963_v12, 0.0 }
 0x3d2   :  { %v1986_v15 = vsel %vm1970_vm13, %v1962_v13, %v1978_v30 }
 0x3d3   :  { %v1987_v40 = vsel %vm1971_vm12, %v1963_v12, %v1979_v52 }
 0x3d4   :  { %1998 = vrot.lane.b32.xlu0 %v1981_v29, %s2203_s22  ;;  %1996 = vrot.lane.b32.xlu1 %v1980_v24, %s2203_s22 }
 0x3d8   :  { %2002 = vrot.lane.b32.xlu0 %v1983_v11, %s2203_s22  ;;  %2000 = vrot.lane.b32.xlu1 %v1982_v32, %s2203_s22 }
 0x3dc   :  { %2006 = vrot.lane.b32.xlu0 %v1985_v47, %s2203_s22  ;;  %2004 = vrot.lane.b32.xlu1 %v1984_v1, %s2203_s22 }
 0x3e0   :  { %2010 = vrot.lane.b32.xlu0 %v1987_v40, %s2203_s22  ;;  %2008 = vrot.lane.b32.xlu1 %v1986_v15, %s2203_s22 }
 0x3fc   :  { %v1749_v36 = vpop.permute.xlu1 %1748 }
 0x3fd   :  { %2089 = vst.msk [vmem:[%s4050_s7 + $0x140] sm:$0xff] %vm611_vm2, %v1749_v36 }
 0x3fe   :  { %v1751_v5 = vpop.permute.xlu0 %1750 }
 0x3ff   :  { %2090 = vst.msk [vmem:[%s4050_s7 + $0x148] sm:$0xff] %vm611_vm2, %v1751_v5 }
 0x402   :  { %v1753_v4 = vpop.permute.xlu1 %1752  ;;  %v1755_v8 = vpop.permute.xlu0 %1754 }
 0x403   :  { %2091 = vst.msk [vmem:[%s4050_s7 + $0x150] sm:$0xff] %vm611_vm2, %v1753_v4  ;;  %2092 = vst.msk [vmem:[%s4050_s7 + $0x158] sm:$0xff] %vm611_vm2, %v1755_v8 }
 0x406   :  { %v1757_v7 = vpop.permute.xlu1 %1756  ;;  %v1759_v0 = vpop.permute.xlu0 %1758 }
 0x407   :  { %2093 = vst.msk [vmem:[%s4050_s7 + $0x160] sm:$0xff] %vm611_vm2, %v1757_v7  ;;  %2094 = vst.msk [vmem:[%s4050_s7 + $0x168] sm:$0xff] %vm611_vm2, %v1759_v0 }
 0x40a   :  { %v1761_v61 = vpop.permute.xlu1 %1760  ;;  %v1763_v31 = vpop.permute.xlu0 %1762 }
 0x40b   :  { %2095 = vst.msk [vmem:[%s4050_s7 + $0x170] sm:$0xff] %vm611_vm2, %v1761_v61  ;;  %2096 = vst.msk [vmem:[%s4050_s7 + $0x178] sm:$0xff] %vm611_vm2, %v1763_v31 }
 0x436   :  { %v1873_v59 = vpop.permute.xlu1 %1872  ;;  %v1875_v20 = vpop.permute.xlu0 %1874 }
 0x437   :  { %2097 = vst.msk [vmem:[%s4050_s7 + $0x180] sm:$0xff] %vm611_vm2, %v1873_v59  ;;  %2098 = vst.msk [vmem:[%s4050_s7 + $0x188] sm:$0xff] %vm611_vm2, %v1875_v20 }
 0x43a   :  { %v1877_v42 = vpop.permute.xlu1 %1876  ;;  %v1879_v43 = vpop.permute.xlu0 %1878 }
 0x43b   :  { %2099 = vst.msk [vmem:[%s4050_s7 + $0x190] sm:$0xff] %vm611_vm2, %v1877_v42  ;;  %2100 = vst.msk [vmem:[%s4050_s7 + $0x198] sm:$0xff] %vm611_vm2, %v1879_v43 }
 0x43e   :  { %v1881_v33 = vpop.permute.xlu1 %1880  ;;  %v1883_v49 = vpop.permute.xlu0 %1882 }
 0x43f   :  { %2101 = vst.msk [vmem:[%s4050_s7 + $0x1a0] sm:$0xff] %vm611_vm2, %v1881_v33  ;;  %2102 = vst.msk [vmem:[%s4050_s7 + $0x1a8] sm:$0xff] %vm611_vm2, %v1883_v49 }
 0x442   :  { %v1885_v19 = vpop.permute.xlu1 %1884  ;;  %v1887_v17 = vpop.permute.xlu0 %1886 }
 0x443   :  { %2103 = vst.msk [vmem:[%s4050_s7 + $0x1b0] sm:$0xff] %vm611_vm2, %v1885_v19  ;;  %2104 = vst.msk [vmem:[%s4050_s7 + $0x1b8] sm:$0xff] %vm611_vm2, %v1887_v17 }
 0x446   :  { %v1997_v37 = vpop.permute.xlu1 %1996  ;;  %v1999_v46 = vpop.permute.xlu0 %1998 }
 0x447   :  { %2105 = vst.msk [vmem:[%s4050_s7 + $0x1c0] sm:$0xff] %vm611_vm2, %v1997_v37  ;;  %2106 = vst.msk [vmem:[%s4050_s7 + $0x1c8] sm:$0xff] %vm611_vm2, %v1999_v46 }
 0x44a   :  { %v2001_v48 = vpop.permute.xlu1 %2000  ;;  %v2003_v63 = vpop.permute.xlu0 %2002 }
 0x44b   :  { %2107 = vst.msk [vmem:[%s4050_s7 + $0x1d0] sm:$0xff] %vm611_vm2, %v2001_v48  ;;  %2108 = vst.msk [vmem:[%s4050_s7 + $0x1d8] sm:$0xff] %vm611_vm2, %v2003_v63 }
 0x44e   :  { %v2005_v18 = vpop.permute.xlu1 %2004  ;;  %v2007_v25 = vpop.permute.xlu0 %2006 }
 0x44f   :  { %2109 = vst.msk [vmem:[%s4050_s7 + $0x1e0] sm:$0xff] %vm611_vm2, %v2005_v18  ;;  %2110 = vst.msk [vmem:[%s4050_s7 + $0x1e8] sm:$0xff] %vm611_vm2, %v2007_v25 }
 0x452   :  { %v2009_v45 = vpop.permute.xlu1 %2008  ;;  %v2011_v21 = vpop.permute.xlu0 %2010 }
 0x453   :  { %2111 = vst.msk [vmem:[%s4050_s7 + $0x1f0] sm:$0xff] %vm611_vm2, %v2009_v45  ;;  %2112 = vst.msk [vmem:[%s4050_s7 + $0x1f8] sm:$0xff] %vm611_vm2, %v2011_v21 }

</bundles_post_ra>
